<compile_context>
chip_gen: v7x
topology: tpu7x:2x2x1
jax: 0.10.0
libtpu: 0.0.40
codegen_flags: <defaults>
</compile_context>

<pallas_src>
import numpy as np
import jax
import jax.numpy as jnp
from jax.experimental import pallas as pl
from jax.experimental.pallas import tpu as pltpu


# ----------------------------- host-side helpers -----------------------------

def _round_up(x, m):
    return ((x + m - 1) // m) * m


def _adaptive_regions(in_size, out_size):
    """PyTorch adaptive-pooling region boundaries [start, end) per output idx."""
    starts = [(i * in_size) // out_size for i in range(out_size)]
    ends = [-(-((i + 1) * in_size) // out_size) for i in range(out_size)]  # ceil
    return starts, ends


def _avg_matrix(in_size, p):
    """(p, in_size) matrix A s.t. A @ v == adaptive_avg_pool1d(v, p)."""
    starts, ends = _adaptive_regions(in_size, p)
    A = np.zeros((p, in_size), np.float32)
    for i, (s, e) in enumerate(zip(starts, ends)):
        A[i, s:e] = 1.0 / (e - s)
    return A


def _region_masks(in_size, p):
    """(p, in_size) 0/1 masks of the adaptive-pooling regions."""
    starts, ends = _adaptive_regions(in_size, p)
    M = np.zeros((p, in_size), np.float32)
    for i, (s, e) in enumerate(zip(starts, ends)):
        M[i, s:e] = 1.0
    return M


def _bilinear_matrix(out_size, p):
    """(out_size, p) matrix L s.t. L @ v == F.interpolate(v, out_size,
    mode='bilinear'/'linear', align_corners=False) along one axis."""
    L = np.zeros((out_size, p), np.float32)
    scale = p / out_size
    for y in range(out_size):
        src = (y + 0.5) * scale - 0.5
        if src < 0.0:
            src = 0.0
        i0 = min(int(np.floor(src)), p - 1)
        frac = src - i0
        i1 = min(i0 + 1, p - 1)
        L[y, i0] += 1.0 - frac
        L[y, i1] += frac
    return L


def _build_constants(H, W, pool_sizes):
    """Host-side precompute of the fused linear maps.

    Returns:
      K_all     (HW, n_pools*HW)  : avg-pool+upsample for all pool sizes, *0.5
      bias_all  (R, HW)           : additive region bias (0 in-region, -1e30 out)
      basis_all (R, n_pools*HW)   : block-diagonal bilinear basis for the max
                                    maps, *0.5.   R = sum(p*p)
    """
    HW = H * W
    n_pools = len(pool_sizes)
    K_blocks, bias_rows, basis_blocks, r_counts = [], [], [], []
    for p in pool_sizes:
        A_h, A_w = _avg_matrix(H, p), _avg_matrix(W, p)
        L_h, L_w = _bilinear_matrix(H, p), _bilinear_matrix(W, p)
        P = L_h @ A_h                                   # (H, H)
        Q = A_w.T @ L_w.T                               # (W, W)
        # out_flat = x_flat @ kron(P.T, Q)  <=>  out = P @ x @ Q
        K_blocks.append(0.5 * np.kron(P.T, Q).astype(np.float32))
        M_h, M_w = _region_masks(H, p), _region_masks(W, p)
        masks = np.einsum("ih,jw->ijhw", M_h, M_w).reshape(p * p, HW)
        bias_rows.append(np.where(masks > 0.5, 0.0, -1e30).astype(np.float32))
        basis = np.einsum("yi,xj->ijyx", L_h, L_w).reshape(p * p, HW)
        basis_blocks.append(0.5 * basis.astype(np.float32))
        r_counts.append(p * p)

    K_all = np.concatenate(K_blocks, axis=1)            # (HW, n_pools*HW)
    bias_all = np.concatenate(bias_rows, axis=0)        # (R, HW)
    R = sum(r_counts)
    basis_all = np.zeros((R, n_pools * HW), np.float32)
    r0 = 0
    for pi, (rp, bl) in enumerate(zip(r_counts, basis_blocks)):
        basis_all[r0:r0 + rp, pi * HW:(pi + 1) * HW] = bl
        r0 += rp
    return K_all, bias_all, basis_all


# --------------------------------- kernel ------------------------------------

def _make_spp_kernel(R):
    def kernel(x_ref, k_ref, bias_ref, basis_ref, o_ref):
        x = x_ref[...].astype(jnp.float32)                  # (TB, HW)

        # avg-pool + bilinear upsample for all pool sizes: one MXU matmul.
        out = jnp.dot(x, k_ref[...], preferred_element_type=jnp.float32)

        # per-region maxes: R additive-bias + lane-max reductions (XLU).
        cols = []
        for k in range(R):                                  # static unroll, R small
            masked = x + bias_ref[pl.ds(k, 1), :]           # (TB, HW)
            cols.append(jnp.max(masked, axis=1, keepdims=True))
        maxmap = jnp.concatenate(cols, axis=1)              # (TB, R)

        # bilinear upsample of all max maps: one MXU matmul (block-diag basis).
        out = out + jnp.dot(maxmap, basis_ref[...],
                            preferred_element_type=jnp.float32)

        o_ref[...] = out.astype(o_ref.dtype)

    return kernel


def spp_layer(x, pool_sizes):
    """Pallas equivalent of SPPLayer.forward.  x: (B, C, H, W) float32."""
    B, C, H, W = x.shape
    HW = H * W
    n_pools = len(pool_sizes)
    BC = B * C

    K_all, bias_all, basis_all = _build_constants(H, W, pool_sizes)
    R = bias_all.shape[0]

    # Batch many slabs per grid step; pad rows to a multiple of the tile.
    TB = min(512, _round_up(BC, 8))
    BC_pad = _round_up(BC, TB)
    x_flat = x.reshape(BC, HW)
    if BC_pad != BC:
        x_flat = jnp.pad(x_flat, ((0, BC_pad - BC), (0, 0)))

    N = n_pools * HW
    flops = 2 * BC_pad * HW * N + 2 * BC_pad * R * N + 3 * BC_pad * R * HW
    bytes_accessed = 4 * (BC_pad * HW + BC_pad * N
                          + K_all.size + bias_all.size + basis_all.size)

    out_flat = pl.pallas_call(
        _make_spp_kernel(R),
        out_shape=jax.ShapeDtypeStruct((BC_pad, N), x.dtype),
        grid_spec=pltpu.PrefetchScalarGridSpec(
            num_scalar_prefetch=0,
            grid=(BC_pad // TB,),
            in_specs=[
                pl.BlockSpec((TB, HW), lambda i: (i, 0)),   # x rows
                pl.BlockSpec((HW, N), lambda i: (0, 0)),    # fused avg map
                pl.BlockSpec((R, HW), lambda i: (0, 0)),    # region bias
                pl.BlockSpec((R, N), lambda i: (0, 0)),     # max-upsample basis
            ],
            out_specs=pl.BlockSpec((TB, N), lambda i: (i, 0)),
        ),
        compiler_params=pltpu.CompilerParams(
            dimension_semantics=("parallel",),
            vmem_limit_bytes=64 << 20),
        cost_estimate=pl.CostEstimate(flops=flops, transcendentals=0,
                                      bytes_accessed=bytes_accessed),
    )(x_flat, jnp.asarray(K_all), jnp.asarray(bias_all), jnp.asarray(basis_all))

    out = out_flat[:BC].reshape(B, C, n_pools, H, W)
    out = jnp.transpose(out, (0, 2, 1, 3, 4)).reshape(B, n_pools * C, H, W)
    return out


# ------------------------- independent numpy reference -----------------------

def spp_ref(x, pool_sizes):
    B, C, H, W = x.shape
    feats = []
    for p in pool_sizes:
        sh, eh = _adaptive_regions(H, p)
        sw, ew = _adaptive_regions(W, p)
        pooled_max = np.zeros((B, C, p, p), np.float32)
        pooled_avg = np.zeros((B, C, p, p), np.float32)
        for i in range(p):
            for j in range(p):
                reg = x[:, :, sh[i]:eh[i], sw[j]:ew[j]]
                pooled_max[:, :, i, j] = reg.max(axis=(2, 3))
                pooled_avg[:, :, i, j] = reg.mean(axis=(2, 3))
        L_h, L_w = _bilinear_matrix(H, p), _bilinear_matrix(W, p)
        up_max = np.einsum("yi,bcij,xj->bcyx", L_h, pooled_max, L_w)
        up_avg = np.einsum("yi,bcij,xj->bcyx", L_h, pooled_avg, L_w)
        feats.append((up_max + up_avg) * 0.5)
    return np.concatenate(feats, axis=1)


if __name__ == "__main__":
    pool_sizes = [1, 2, 4]
    key = jax.random.PRNGKey(0)
    x = jax.random.normal(key, (2, 4, 16, 16), dtype=jnp.float32)

    out = spp_layer(x, pool_sizes)
    out = jax.block_until_ready(out)

    assert out.shape == (2, 4 * len(pool_sizes), 16, 16), out.shape
    ref = spp_ref(np.asarray(x), pool_sizes)
    np.testing.assert_allclose(np.asarray(out), ref, atol=2e-4, rtol=2e-4)
    print("KERNEL_OK")
</pallas_src>

<mosaic_0001>
module attributes {stable_mosaic.version = 11 : i64} {
  func.func @kernel(%arg0: i32, %arg1: memref<8x256xf32, #tpu.memory_space<vmem>>, %arg2: memref<256x768xf32, #tpu.memory_space<vmem>>, %arg3: memref<21x256xf32, #tpu.memory_space<vmem>>, %arg4: memref<21x768xf32, #tpu.memory_space<vmem>>, %arg5: memref<8x768xf32, #tpu.memory_space<vmem>>) attributes {dimension_semantics = [#tpu.dimension_semantics<parallel>], iteration_bounds = array<i64: 1>, scalar_prefetch = 0 : i64, scratch_operands = 0 : i64, tpu.core_type = #tpu.core_type<tc>, window_params = [{transform_indices = @transform_0, window_bounds = array<i64: 8, 256>}, {pipeline_mode = #tpu.pipeline_mode<synchronous>, transform_indices = @transform_1, window_bounds = array<i64: 256, 768>}, {pipeline_mode = #tpu.pipeline_mode<synchronous>, transform_indices = @transform_2, window_bounds = array<i64: 21, 256>}, {pipeline_mode = #tpu.pipeline_mode<synchronous>, transform_indices = @transform_3, window_bounds = array<i64: 21, 768>}, {transform_indices = @transform_4, window_bounds = array<i64: 8, 768>}]} {
    %c0 = arith.constant 0 : index
    %c0_0 = arith.constant 0 : index
    %0 = vector.load %arg1[%c0, %c0_0] : memref<8x256xf32, #tpu.memory_space<vmem>>, vector<8x256xf32>
    %c0_1 = arith.constant 0 : index
    %c0_2 = arith.constant 0 : index
    %1 = vector.load %arg2[%c0_1, %c0_2] : memref<256x768xf32, #tpu.memory_space<vmem>>, vector<256x768xf32>
    %cst = arith.constant dense<0.000000e+00> : vector<8x768xf32>
    %2 = tpu.matmul %0, %1, %cst {dimension_numbers = #tpu.dot_dimension_numbers<[1], [0], [0], [1], [0, 0, 1, 1], [], []>} : vector<8x256xf32>, vector<256x768xf32>, vector<8x768xf32> -> vector<8x768xf32>
    %c0_3 = arith.constant 0 : index
    %c0_4 = arith.constant 0 : index
    %3 = vector.load %arg3[%c0_3, %c0_4] : memref<21x256xf32, #tpu.memory_space<vmem>>, vector<1x256xf32>
    %4 = vector.broadcast %3 : vector<1x256xf32> to vector<8x256xf32>
    %5 = arith.addf %0, %4 : vector<8x256xf32>
    %cst_5 = arith.constant dense<0xFF800000> : vector<8xf32>
    %6 = vector.multi_reduction <maximumf>, %5, %cst_5 [1] : vector<8x256xf32> to vector<8xf32>
    %7 = vector.shape_cast %6 : vector<8xf32> to vector<8x1xf32>
    %c1 = arith.constant 1 : index
    %c0_6 = arith.constant 0 : index
    %8 = vector.load %arg3[%c1, %c0_6] : memref<21x256xf32, #tpu.memory_space<vmem>>, vector<1x256xf32>
    %9 = vector.broadcast %8 : vector<1x256xf32> to vector<8x256xf32>
    %10 = arith.addf %0, %9 : vector<8x256xf32>
    %cst_7 = arith.constant dense<0xFF800000> : vector<8xf32>
    %11 = vector.multi_reduction <maximumf>, %10, %cst_7 [1] : vector<8x256xf32> to vector<8xf32>
    %12 = vector.shape_cast %11 : vector<8xf32> to vector<8x1xf32>
    %c2 = arith.constant 2 : index
    %c0_8 = arith.constant 0 : index
    %13 = vector.load %arg3[%c2, %c0_8] : memref<21x256xf32, #tpu.memory_space<vmem>>, vector<1x256xf32>
    %14 = vector.broadcast %13 : vector<1x256xf32> to vector<8x256xf32>
    %15 = arith.addf %0, %14 : vector<8x256xf32>
    %cst_9 = arith.constant dense<0xFF800000> : vector<8xf32>
    %16 = vector.multi_reduction <maximumf>, %15, %cst_9 [1] : vector<8x256xf32> to vector<8xf32>
    %17 = vector.shape_cast %16 : vector<8xf32> to vector<8x1xf32>
    %c3 = arith.constant 3 : index
    %c0_10 = arith.constant 0 : index
    %18 = vector.load %arg3[%c3, %c0_10] : memref<21x256xf32, #tpu.memory_space<vmem>>, vector<1x256xf32>
    %19 = vector.broadcast %18 : vector<1x256xf32> to vector<8x256xf32>
    %20 = arith.addf %0, %19 : vector<8x256xf32>
    %cst_11 = arith.constant dense<0xFF800000> : vector<8xf32>
    %21 = vector.multi_reduction <maximumf>, %20, %cst_11 [1] : vector<8x256xf32> to vector<8xf32>
    %22 = vector.shape_cast %21 : vector<8xf32> to vector<8x1xf32>
    %c4 = arith.constant 4 : index
    %c0_12 = arith.constant 0 : index
    %23 = vector.load %arg3[%c4, %c0_12] : memref<21x256xf32, #tpu.memory_space<vmem>>, vector<1x256xf32>
    %24 = vector.broadcast %23 : vector<1x256xf32> to vector<8x256xf32>
    %25 = arith.addf %0, %24 : vector<8x256xf32>
    %cst_13 = arith.constant dense<0xFF800000> : vector<8xf32>
    %26 = vector.multi_reduction <maximumf>, %25, %cst_13 [1] : vector<8x256xf32> to vector<8xf32>
    %27 = vector.shape_cast %26 : vector<8xf32> to vector<8x1xf32>
    %c5 = arith.constant 5 : index
    %c0_14 = arith.constant 0 : index
    %28 = vector.load %arg3[%c5, %c0_14] : memref<21x256xf32, #tpu.memory_space<vmem>>, vector<1x256xf32>
    %29 = vector.broadcast %28 : vector<1x256xf32> to vector<8x256xf32>
    %30 = arith.addf %0, %29 : vector<8x256xf32>
    %cst_15 = arith.constant dense<0xFF800000> : vector<8xf32>
    %31 = vector.multi_reduction <maximumf>, %30, %cst_15 [1] : vector<8x256xf32> to vector<8xf32>
    %32 = vector.shape_cast %31 : vector<8xf32> to vector<8x1xf32>
    %c6 = arith.constant 6 : index
    %c0_16 = arith.constant 0 : index
    %33 = vector.load %arg3[%c6, %c0_16] : memref<21x256xf32, #tpu.memory_space<vmem>>, vector<1x256xf32>
    %34 = vector.broadcast %33 : vector<1x256xf32> to vector<8x256xf32>
    %35 = arith.addf %0, %34 : vector<8x256xf32>
    %cst_17 = arith.constant dense<0xFF800000> : vector<8xf32>
    %36 = vector.multi_reduction <maximumf>, %35, %cst_17 [1] : vector<8x256xf32> to vector<8xf32>
    %37 = vector.shape_cast %36 : vector<8xf32> to vector<8x1xf32>
    %c7 = arith.constant 7 : index
    %c0_18 = arith.constant 0 : index
    %38 = vector.load %arg3[%c7, %c0_18] : memref<21x256xf32, #tpu.memory_space<vmem>>, vector<1x256xf32>
    %39 = vector.broadcast %38 : vector<1x256xf32> to vector<8x256xf32>
    %40 = arith.addf %0, %39 : vector<8x256xf32>
    %cst_19 = arith.constant dense<0xFF800000> : vector<8xf32>
    %41 = vector.multi_reduction <maximumf>, %40, %cst_19 [1] : vector<8x256xf32> to vector<8xf32>
    %42 = vector.shape_cast %41 : vector<8xf32> to vector<8x1xf32>
    %c8 = arith.constant 8 : index
    %c0_20 = arith.constant 0 : index
    %43 = vector.load %arg3[%c8, %c0_20] : memref<21x256xf32, #tpu.memory_space<vmem>>, vector<1x256xf32>
    %44 = vector.broadcast %43 : vector<1x256xf32> to vector<8x256xf32>
    %45 = arith.addf %0, %44 : vector<8x256xf32>
    %cst_21 = arith.constant dense<0xFF800000> : vector<8xf32>
    %46 = vector.multi_reduction <maximumf>, %45, %cst_21 [1] : vector<8x256xf32> to vector<8xf32>
    %47 = vector.shape_cast %46 : vector<8xf32> to vector<8x1xf32>
    %c9 = arith.constant 9 : index
    %c0_22 = arith.constant 0 : index
    %48 = vector.load %arg3[%c9, %c0_22] : memref<21x256xf32, #tpu.memory_space<vmem>>, vector<1x256xf32>
    %49 = vector.broadcast %48 : vector<1x256xf32> to vector<8x256xf32>
    %50 = arith.addf %0, %49 : vector<8x256xf32>
    %cst_23 = arith.constant dense<0xFF800000> : vector<8xf32>
    %51 = vector.multi_reduction <maximumf>, %50, %cst_23 [1] : vector<8x256xf32> to vector<8xf32>
    %52 = vector.shape_cast %51 : vector<8xf32> to vector<8x1xf32>
    %c10 = arith.constant 10 : index
    %c0_24 = arith.constant 0 : index
    %53 = vector.load %arg3[%c10, %c0_24] : memref<21x256xf32, #tpu.memory_space<vmem>>, vector<1x256xf32>
    %54 = vector.broadcast %53 : vector<1x256xf32> to vector<8x256xf32>
    %55 = arith.addf %0, %54 : vector<8x256xf32>
    %cst_25 = arith.constant dense<0xFF800000> : vector<8xf32>
    %56 = vector.multi_reduction <maximumf>, %55, %cst_25 [1] : vector<8x256xf32> to vector<8xf32>
    %57 = vector.shape_cast %56 : vector<8xf32> to vector<8x1xf32>
    %c11 = arith.constant 11 : index
    %c0_26 = arith.constant 0 : index
    %58 = vector.load %arg3[%c11, %c0_26] : memref<21x256xf32, #tpu.memory_space<vmem>>, vector<1x256xf32>
    %59 = vector.broadcast %58 : vector<1x256xf32> to vector<8x256xf32>
    %60 = arith.addf %0, %59 : vector<8x256xf32>
    %cst_27 = arith.constant dense<0xFF800000> : vector<8xf32>
    %61 = vector.multi_reduction <maximumf>, %60, %cst_27 [1] : vector<8x256xf32> to vector<8xf32>
    %62 = vector.shape_cast %61 : vector<8xf32> to vector<8x1xf32>
    %c12 = arith.constant 12 : index
    %c0_28 = arith.constant 0 : index
    %63 = vector.load %arg3[%c12, %c0_28] : memref<21x256xf32, #tpu.memory_space<vmem>>, vector<1x256xf32>
    %64 = vector.broadcast %63 : vector<1x256xf32> to vector<8x256xf32>
    %65 = arith.addf %0, %64 : vector<8x256xf32>
    %cst_29 = arith.constant dense<0xFF800000> : vector<8xf32>
    %66 = vector.multi_reduction <maximumf>, %65, %cst_29 [1] : vector<8x256xf32> to vector<8xf32>
    %67 = vector.shape_cast %66 : vector<8xf32> to vector<8x1xf32>
    %c13 = arith.constant 13 : index
    %c0_30 = arith.constant 0 : index
    %68 = vector.load %arg3[%c13, %c0_30] : memref<21x256xf32, #tpu.memory_space<vmem>>, vector<1x256xf32>
    %69 = vector.broadcast %68 : vector<1x256xf32> to vector<8x256xf32>
    %70 = arith.addf %0, %69 : vector<8x256xf32>
    %cst_31 = arith.constant dense<0xFF800000> : vector<8xf32>
    %71 = vector.multi_reduction <maximumf>, %70, %cst_31 [1] : vector<8x256xf32> to vector<8xf32>
    %72 = vector.shape_cast %71 : vector<8xf32> to vector<8x1xf32>
    %c14 = arith.constant 14 : index
    %c0_32 = arith.constant 0 : index
    %73 = vector.load %arg3[%c14, %c0_32] : memref<21x256xf32, #tpu.memory_space<vmem>>, vector<1x256xf32>
    %74 = vector.broadcast %73 : vector<1x256xf32> to vector<8x256xf32>
    %75 = arith.addf %0, %74 : vector<8x256xf32>
    %cst_33 = arith.constant dense<0xFF800000> : vector<8xf32>
    %76 = vector.multi_reduction <maximumf>, %75, %cst_33 [1] : vector<8x256xf32> to vector<8xf32>
    %77 = vector.shape_cast %76 : vector<8xf32> to vector<8x1xf32>
    %c15 = arith.constant 15 : index
    %c0_34 = arith.constant 0 : index
    %78 = vector.load %arg3[%c15, %c0_34] : memref<21x256xf32, #tpu.memory_space<vmem>>, vector<1x256xf32>
    %79 = vector.broadcast %78 : vector<1x256xf32> to vector<8x256xf32>
    %80 = arith.addf %0, %79 : vector<8x256xf32>
    %cst_35 = arith.constant dense<0xFF800000> : vector<8xf32>
    %81 = vector.multi_reduction <maximumf>, %80, %cst_35 [1] : vector<8x256xf32> to vector<8xf32>
    %82 = vector.shape_cast %81 : vector<8xf32> to vector<8x1xf32>
    %c16 = arith.constant 16 : index
    %c0_36 = arith.constant 0 : index
    %83 = vector.load %arg3[%c16, %c0_36] : memref<21x256xf32, #tpu.memory_space<vmem>>, vector<1x256xf32>
    %84 = vector.broadcast %83 : vector<1x256xf32> to vector<8x256xf32>
    %85 = arith.addf %0, %84 : vector<8x256xf32>
    %cst_37 = arith.constant dense<0xFF800000> : vector<8xf32>
    %86 = vector.multi_reduction <maximumf>, %85, %cst_37 [1] : vector<8x256xf32> to vector<8xf32>
    %87 = vector.shape_cast %86 : vector<8xf32> to vector<8x1xf32>
    %c17 = arith.constant 17 : index
    %c0_38 = arith.constant 0 : index
    %88 = vector.load %arg3[%c17, %c0_38] : memref<21x256xf32, #tpu.memory_space<vmem>>, vector<1x256xf32>
    %89 = vector.broadcast %88 : vector<1x256xf32> to vector<8x256xf32>
    %90 = arith.addf %0, %89 : vector<8x256xf32>
    %cst_39 = arith.constant dense<0xFF800000> : vector<8xf32>
    %91 = vector.multi_reduction <maximumf>, %90, %cst_39 [1] : vector<8x256xf32> to vector<8xf32>
    %92 = vector.shape_cast %91 : vector<8xf32> to vector<8x1xf32>
    %c18 = arith.constant 18 : index
    %c0_40 = arith.constant 0 : index
    %93 = vector.load %arg3[%c18, %c0_40] : memref<21x256xf32, #tpu.memory_space<vmem>>, vector<1x256xf32>
    %94 = vector.broadcast %93 : vector<1x256xf32> to vector<8x256xf32>
    %95 = arith.addf %0, %94 : vector<8x256xf32>
    %cst_41 = arith.constant dense<0xFF800000> : vector<8xf32>
    %96 = vector.multi_reduction <maximumf>, %95, %cst_41 [1] : vector<8x256xf32> to vector<8xf32>
    %97 = vector.shape_cast %96 : vector<8xf32> to vector<8x1xf32>
    %c19 = arith.constant 19 : index
    %c0_42 = arith.constant 0 : index
    %98 = vector.load %arg3[%c19, %c0_42] : memref<21x256xf32, #tpu.memory_space<vmem>>, vector<1x256xf32>
    %99 = vector.broadcast %98 : vector<1x256xf32> to vector<8x256xf32>
    %100 = arith.addf %0, %99 : vector<8x256xf32>
    %cst_43 = arith.constant dense<0xFF800000> : vector<8xf32>
    %101 = vector.multi_reduction <maximumf>, %100, %cst_43 [1] : vector<8x256xf32> to vector<8xf32>
    %102 = vector.shape_cast %101 : vector<8xf32> to vector<8x1xf32>
    %c20 = arith.constant 20 : index
    %c0_44 = arith.constant 0 : index
    %103 = vector.load %arg3[%c20, %c0_44] : memref<21x256xf32, #tpu.memory_space<vmem>>, vector<1x256xf32>
    %104 = vector.broadcast %103 : vector<1x256xf32> to vector<8x256xf32>
    %105 = arith.addf %0, %104 : vector<8x256xf32>
    %cst_45 = arith.constant dense<0xFF800000> : vector<8xf32>
    %106 = vector.multi_reduction <maximumf>, %105, %cst_45 [1] : vector<8x256xf32> to vector<8xf32>
    %107 = vector.shape_cast %106 : vector<8xf32> to vector<8x1xf32>
    %108 = tpu.concatenate %7, %12, %17, %22, %27, %32, %37, %42, %47, %52, %57, %62, %67, %72, %77, %82 in 1 : vector<8x1xf32>, vector<8x1xf32>, vector<8x1xf32>, vector<8x1xf32>, vector<8x1xf32>, vector<8x1xf32>, vector<8x1xf32>, vector<8x1xf32>, vector<8x1xf32>, vector<8x1xf32>, vector<8x1xf32>, vector<8x1xf32>, vector<8x1xf32>, vector<8x1xf32>, vector<8x1xf32>, vector<8x1xf32> -> vector<8x16xf32>
    %109 = tpu.concatenate %87, %92, %97, %102, %107 in 1 : vector<8x1xf32>, vector<8x1xf32>, vector<8x1xf32>, vector<8x1xf32>, vector<8x1xf32> -> vector<8x5xf32>
    %110 = tpu.concatenate %108, %109 in 1 : vector<8x16xf32>, vector<8x5xf32> -> vector<8x21xf32>
    %c0_46 = arith.constant 0 : index
    %c0_47 = arith.constant 0 : index
    %111 = vector.load %arg4[%c0_46, %c0_47] : memref<21x768xf32, #tpu.memory_space<vmem>>, vector<21x768xf32>
    %cst_48 = arith.constant dense<0.000000e+00> : vector<8x768xf32>
    %112 = tpu.matmul %110, %111, %cst_48 {dimension_numbers = #tpu.dot_dimension_numbers<[1], [0], [0], [1], [0, 0, 1, 1], [], []>} : vector<8x21xf32>, vector<21x768xf32>, vector<8x768xf32> -> vector<8x768xf32>
    %113 = arith.addf %2, %112 : vector<8x768xf32>
    %c0_49 = arith.constant 0 : index
    %c0_50 = arith.constant 0 : index
    %114 = vector.load %arg5[%c0_49, %c0_50] : memref<8x768xf32, #tpu.memory_space<vmem>>, vector<8x768xf32>
    tpu.vector_store %arg5[%c0_49, %c0_50], %113 {strides = array<i32>} : memref<8x768xf32, #tpu.memory_space<vmem>>, vector<8x768xf32>,
    return
  }
  func.func @transform_0(%arg0: i32) -> (i32, i32) {
    %c0_i32 = arith.constant 0 : i32
    %c0_i32_0 = arith.constant 0 : i32
    return %arg0, %c0_i32 : i32, i32
  }
  func.func @transform_1(%arg0: i32) -> (i32, i32) {
    %c0_i32 = arith.constant 0 : i32
    %c0_i32_0 = arith.constant 0 : i32
    %c0_i32_1 = arith.constant 0 : i32
    return %c0_i32, %c0_i32_0 : i32, i32
  }
  func.func @transform_2(%arg0: i32) -> (i32, i32) {
    %c0_i32 = arith.constant 0 : i32
    %c0_i32_0 = arith.constant 0 : i32
    %c0_i32_1 = arith.constant 0 : i32
    return %c0_i32, %c0_i32_0 : i32, i32
  }
  func.func @transform_3(%arg0: i32) -> (i32, i32) {
    %c0_i32 = arith.constant 0 : i32
    %c0_i32_0 = arith.constant 0 : i32
    %c0_i32_1 = arith.constant 0 : i32
    return %c0_i32, %c0_i32_0 : i32, i32
  }
  func.func @transform_4(%arg0: i32) -> (i32, i32) {
    %c0_i32 = arith.constant 0 : i32
    %c0_i32_0 = arith.constant 0 : i32
    return %arg0, %c0_i32 : i32, i32
  }
}

</mosaic_0001>

<bundles_post_ra>
// kernel: tpu_custom_call.1
= control target key start
LH: loop header
LB: loop body
LE: loop exit
PB: predicated region body
PF: predicated region fallthrough
CT: control target
= control target key end

     0   :  { %9 = vsyncpa [#allocation3], 0  ;;  %s1740_s0 = inlined_call_operand.hbm [shape: f32[8,256], index: 0, kind: input, shape index: {}]   ;;  %s1741_s1 = inlined_call_operand.hbm [shape: f32[256,768], index: 1, kind: input, shape index: {}]   ;;  %s1742_s2 = inlined_call_operand.hbm [shape: f32[21,256], index: 2, kind: input, shape index: {}]   ;;  %s1743_s3 = inlined_call_operand.hbm [shape: f32[21,768], index: 3, kind: input, shape index: {}]   ;;  %s1744_s4 = inlined_call_operand.hbm [shape: f32[8,768], index: 4, kind: output, shape index: {}]  }
   0x1   :  { %10 = vsyncpa [#allocation6], 0 }
   0x2   :  { %11 = vsyncpa [#allocation9], 0 }
   0x3   :  { %12 = vsyncpa [#allocation4], 0  ;;  %s1521_s15 = smov [#allocation5]   ;;  %s1403_s19 = scalar_lea.hbm %s1741_s1, 24576 }
   0x4   :  { %s28_s16 = sshll.u32 %s1521_s15, 4  ;;  %p1404_p0 = scmp.ne.s32.totalorder %s1741_s1, %s1403_s19  ;;  %s29_s16 = int_to_ptr.vmem [resolvable:$true] %s28_s16 }
   0x5   :  { %p1407_p1 = scmp.lt.u32.totalorder %s1403_s19, %s1741_s1 }
   0x7   :  { %p1409_p2 = pnand %p1407_p1, %p1404_p0 }
   0x9   :  { %1412 = shalt.err (!%p1409_p2)
}
   0xa   :  { %s1413_s24 = scalar_lea.vmem %s29_s16, 24576  ;;  %p1418_p4 = scmp.lt.s32.totalorder %s29_s16, %s29_s16 }
   0xb   :  { %p1414_p3 = scmp.ne.s32.totalorder %s29_s16, %s1413_s24  ;;  %p1419_p5 = scmp.lt.s32.totalorder %s1413_s24, %s1413_s24 }
   0xd   :  { %p1420_p6 = por %p1419_p5, %p1418_p4 }
   0xf   :  { %p1421_p7 = pnand %p1420_p6, %p1414_p3 }
  0x11   :  { %1424 = shalt.err (!%p1421_p7)
}
  0x12   :  { %s1522_s25 = smov 768   ;;  %s1523_s26 = smov 48  }
  0x13   :  { %34 = dma.hbm_to_vmem [thread:$0]  %s1741_s1, 24576, %s29_s16, [#allocation6], %s1522_s25, %s1522_s25, %s1523_s26  }
  0x14   :  { %s1524_s29 = smov [#allocation2]   ;;  %s1525_s5 = smov [#allocation7]  }
  0x15   :  { %s19_s30 = sshll.u32 %s1524_s29, 4  ;;  %s40_s6 = sshll.u32 %s1525_s5, 4  ;;  %s20_s30 = int_to_ptr.vmem [resolvable:$true] %s19_s30  ;;  %s41_s6 = int_to_ptr.vmem [resolvable:$true] %s40_s6 }
  0x16   :  { %s1425_s9 = scalar_lea.hbm %s1740_s0, 256 }
  0x17   :  { %p1426_p8 = scmp.ne.s32.totalorder %s1740_s0, %s1425_s9  ;;  %p1429_p9 = scmp.lt.u32.totalorder %s1425_s9, %s1740_s0 }
  0x19   :  { %p1431_p10 = pnand %p1429_p9, %p1426_p8 }
  0x1b   :  { %1434 = shalt.err (!%p1431_p10)
}
  0x1c   :  { %s1435_s1 = scalar_lea.vmem %s20_s30, 256  ;;  %p1440_p12 = scmp.lt.s32.totalorder %s20_s30, %s20_s30 }
  0x1d   :  { %p1436_p11 = scmp.ne.s32.totalorder %s20_s30, %s1435_s1  ;;  %p1441_p13 = scmp.lt.s32.totalorder %s1435_s1, %s1435_s1 }
  0x1f   :  { %p1442_p0 = por %p1441_p13, %p1440_p12 }
  0x21   :  { %p1443_p1 = pnand %p1442_p0, %p1436_p11 }
  0x23   :  { %1446 = shalt.err (!%p1443_p1)
}
  0x24   :  { %22 = dma.hbm_to_vmem [thread:$0]  %s1740_s0, 256, %s20_s30, [#allocation3]  }
  0x25   :  { %s1447_s18 = scalar_lea.hbm %s1742_s2, 768 }
  0x26   :  { %p1448_p2 = scmp.ne.s32.totalorder %s1742_s2, %s1447_s18  ;;  %p1451_p3 = scmp.lt.u32.totalorder %s1447_s18, %s1742_s2 }
  0x28   :  { %p1453_p4 = pnand %p1451_p3, %p1448_p2 }
  0x2a   :  { %1456 = shalt.err (!%p1453_p4)
}
  0x2b   :  { %s1457_s23 = scalar_lea.vmem %s41_s6, 768  ;;  %p1462_p6 = scmp.lt.s32.totalorder %s41_s6, %s41_s6 }
  0x2c   :  { %p1458_p5 = scmp.ne.s32.totalorder %s41_s6, %s1457_s23  ;;  %p1463_p7 = scmp.lt.s32.totalorder %s1457_s23, %s1457_s23 }
  0x2e   :  { %p1464_p8 = por %p1463_p7, %p1462_p6 }
  0x30   :  { %p1465_p9 = pnand %p1464_p8, %p1458_p5 }
  0x32   :  { %1468 = shalt.err (!%p1465_p9)
}
  0x33   :  { %s1526_s0 = smov 256   ;;  %s1527_s24 = smov 16  }
  0x34   :  { %46 = dma.hbm_to_vmem [thread:$0]  %s1742_s2, 768, %s41_s6, [#allocation6], %s1526_s0, %s1526_s0, %s1527_s24  }
  0x35   :  { %s1528_s29 = smov [#allocation8]   ;;  %s1469_s8 = scalar_lea.hbm %s1743_s3, 2304 }
  0x36   :  { %s52_s30 = sshll.u32 %s1528_s29, 4  ;;  %p1470_p10 = scmp.ne.s32.totalorder %s1743_s3, %s1469_s8  ;;  %s53_s30 = int_to_ptr.vmem [resolvable:$true] %s52_s30 }
  0x37   :  { %p1473_p11 = scmp.lt.u32.totalorder %s1469_s8, %s1743_s3 }
  0x39   :  { %p1475_p12 = pnand %p1473_p11, %p1470_p10 }
  0x3b   :  { %1478 = shalt.err (!%p1475_p12)
}
  0x3c   :  { %s1479_s13 = scalar_lea.vmem %s53_s30, 2304  ;;  %p1484_p0 = scmp.lt.s32.totalorder %s53_s30, %s53_s30 }
  0x3d   :  { %p1480_p13 = scmp.ne.s32.totalorder %s53_s30, %s1479_s13  ;;  %p1485_p1 = scmp.lt.s32.totalorder %s1479_s13, %s1479_s13 }
  0x3f   :  { %p1486_p2 = por %p1485_p1, %p1484_p0 }
  0x41   :  { %p1487_p3 = pnand %p1486_p2, %p1480_p13 }
  0x43   :  { %1490 = shalt.err (!%p1487_p3)
}
  0x44   :  { %58 = dma.hbm_to_vmem [thread:$0]  %s1743_s3, 2304, %s53_s30, [#allocation9], %s1522_s25, %s1522_s25, %s1523_s26  }
  0x45   :  { %1513 = dma.done.wait [#allocation3], 256  }
  0x46   :  { %1514 = vsyncadd [#allocation3], 4294967040 }
  0x47   :  { %1515 = dma.done.wait [#allocation6], 25344  }
  0x48   :  { %1516 = vsyncadd [#allocation6], 4294941952 }
  0x49   :  { %1517 = dma.done.wait [#allocation9], 2304  }
  0x4a   :  { %1518 = vsyncadd [#allocation9], 4294964992  ;;  %v267_v0 = vlaneseq  ;;  %v1615_v4 = vld [vmem:[#allocation2] sm:$0xff]  ;;  %v1617_v5 = vld [vmem:[#allocation2 + $0x8] sm:$0xff]  ;;  %vm704_vm0 = vcmask 1044480   ;;  %vm642_vm1 = vcmask 7168  }
  0x4b   :  { %v553_v6 = vld [vmem:[#allocation7 + $0x20] ss:$8 sm:$0x3]  ;;  %v589_v9 = vld [vmem:[#allocation7 + $0x22] ss:$8 sm:$0x3]  ;;  %1000 = vmatprep.mubr.f32.mxu0 %v1617_v5 }
  0x4c   :  { %v268_v1 = vshrl.u32 %v267_v0, 7  ;;  %v571_v10 = vld [vmem:[#allocation7 + $0x21] ss:$8 sm:$0x3]  ;;  %vm644_vm2 = vcmask 15360   ;;  %vm646_vm3 = vcmask 23552  }
  0x4d   :  { %v607_v15 = vld [vmem:[#allocation7 + $0x23] ss:$8 sm:$0x3]  ;;  %v625_v16 = vld [vmem:[#allocation7 + $0x24] ss:$8 sm:$0x3] }
  0x4e   :  { %v1611_v2 = vsub.s32 0, %v268_v1  ;;  %v1613_v3 = vsub.s32 1, %v268_v1  ;;  %v265_v21 = vld [vmem:[#allocation7] ss:$8 sm:$0x3]  ;;  %vm648_vm4 = vcmask 31744  }
  0x4f   :  { %v283_v26 = vld [vmem:[#allocation7 + $0x1] ss:$8 sm:$0x3]  ;;  %v301_v31 = vld [vmem:[#allocation7 + $0x2] ss:$8 sm:$0x3] }
  0x50   :  { %v558_v7 = vrot.slane %v553_v6, %v1611_v2  ;;  %v562_v8 = vrot.slane %v553_v6, %v1613_v3  ;;  %v594_v11 = vrot.slane %v589_v9, %v1611_v2  ;;  %v598_v12 = vrot.slane %v589_v9, %v1613_v3  ;;  %v319_v40 = vld [vmem:[#allocation7 + $0x3] ss:$8 sm:$0x3]  ;;  %v337_v47 = vld [vmem:[#allocation7 + $0x4] ss:$8 sm:$0x3] }
  0x51   :  { %v576_v13 = vrot.slane %v571_v10, %v1611_v2  ;;  %v580_v14 = vrot.slane %v571_v10, %v1613_v3  ;;  %v612_v19 = vrot.slane %v607_v15, %v1611_v2  ;;  %v616_v20 = vrot.slane %v607_v15, %v1613_v3  ;;  %v355_v54 = vld [vmem:[#allocation7 + $0x5] ss:$8 sm:$0x3]  ;;  %v373_v59 = vld [vmem:[#allocation7 + $0x6] ss:$8 sm:$0x3] }
  0x52   :  { %v565_v17 = vadd.f32 %v558_v7, %v1615_v4  ;;  %v566_v18 = vadd.f32 %v562_v8, %v1617_v5  ;;  %v601_v22 = vadd.f32 %v594_v11, %v1615_v4  ;;  %v602_v23 = vadd.f32 %v598_v12, %v1617_v5  ;;  %v391_v6 = vld [vmem:[#allocation7 + $0x7] ss:$8 sm:$0x3]  ;;  %v409_v11 = vld [vmem:[#allocation7 + $0x10] ss:$8 sm:$0x3] }
  0x53   :  { %v583_v24 = vadd.f32 %v576_v13, %v1615_v4  ;;  %v584_v25 = vadd.f32 %v580_v14, %v1617_v5  ;;  %v619_v28 = vadd.f32 %v612_v19, %v1615_v4  ;;  %v620_v29 = vadd.f32 %v616_v20, %v1617_v5  ;;  %s1530_s3 = smov [#allocation10]  }
  0x54   :  { %v567_v27 = vmax.f32 %v565_v17, %v566_v18  ;;  %v630_v30 = vrot.slane %v625_v16, %v1611_v2  ;;  %v603_v32 = vmax.f32 %v601_v22, %v602_v23  ;;  %v634_v34 = vrot.slane %v625_v16, %v1613_v3  ;;  %v427_v22 = vld [vmem:[#allocation7 + $0x11] ss:$8 sm:$0x3]  ;;  %v445_v23 = vld [vmem:[#allocation7 + $0x12] ss:$8 sm:$0x3] }
  0x55   :  { %v585_v33 = vmax.f32 %v583_v24, %v584_v25  ;;  %v270_v35 = vrot.slane %v265_v21, %v1611_v2  ;;  %v621_v36 = vmax.f32 %v619_v28, %v620_v29  ;;  %v274_v38 = vrot.slane %v265_v21, %v1613_v3  ;;  %s1161_s25 = sshll.u32 %s1530_s3, 4  ;;  %s1162_s25 = int_to_ptr.vmem [resolvable:$true] %s1161_s25 }
  0x56   :  { %568 = vmax.xlane.f32.xlu0 %v567_v27  ;;  %v637_v37 = vadd.f32 %v630_v30, %v1615_v4  ;;  %v288_v39 = vrot.slane %v283_v26, %v1611_v2  ;;  %604 = vmax.xlane.f32.xlu1 %v603_v32  ;;  %v638_v41 = vadd.f32 %v634_v34, %v1617_v5  ;;  %v463_v27 = vld [vmem:[#allocation7 + $0x13] ss:$8 sm:$0x3]  ;;  %v481_v32 = vld [vmem:[#allocation7 + $0x14] ss:$8 sm:$0x3]  ;;  %p1496_p5 = scmp.lt.s32.totalorder %s1162_s25, %s1162_s25 }
  0x57   :  { %v277_v42 = vadd.f32 %v270_v35, %v1615_v4  ;;  %v292_v43 = vrot.slane %v283_v26, %v1613_v3  ;;  %v306_v44 = vrot.slane %v301_v31, %v1611_v2  ;;  %v278_v45 = vadd.f32 %v274_v38, %v1617_v5  ;;  %s1491_s26 = scalar_lea.vmem %s1162_s25, 768 }
  0x58   :  { %v310_v46 = vrot.slane %v301_v31, %v1613_v3  ;;  %v295_v48 = vadd.f32 %v288_v39, %v1615_v4  ;;  %v324_v49 = vrot.slane %v319_v40, %v1611_v2  ;;  %v639_v50 = vmax.f32 %v637_v37, %v638_v41  ;;  %v74_v41 = vld [vmem:[#allocation5 + $0x8] sm:$0xff]  ;;  %p1492_p4 = scmp.ne.s32.totalorder %s1162_s25, %s1491_s26  ;;  %p1497_p6 = scmp.lt.s32.totalorder %s1491_s26, %s1491_s26 }
  0x59   :  { %v296_v51 = vadd.f32 %v292_v43, %v1617_v5  ;;  %v313_v52 = vadd.f32 %v306_v44, %v1615_v4  ;;  %v328_v53 = vrot.slane %v319_v40, %v1613_v3  ;;  %v279_v55 = vmax.f32 %v277_v42, %v278_v45  ;;  %v80_v42 = vld [vmem:[#allocation5 + $0x38] sm:$0xff] }
  0x5a   :  { %586 = vmax.xlane.f32.xlu0 %v585_v33  ;;  %622 = vmax.xlane.f32.xlu1 %v621_v36  ;;  %v314_v56 = vadd.f32 %v310_v46, %v1617_v5  ;;  %v342_v57 = vrot.slane %v337_v47, %v1611_v2  ;;  %v346_v58 = vrot.slane %v337_v47, %v1613_v3  ;;  %v499_v47 = vld [vmem:[#allocation7 + $0x15] ss:$8 sm:$0x3]  ;;  %vm650_vm5 = vcmask 39936   ;;  %p1498_p7 = por %p1497_p6, %p1496_p5 }
  0x5b   :  { %v360_v60 = vrot.slane %v355_v54, %v1611_v2  ;;  %v364_v61 = vrot.slane %v355_v54, %v1613_v3  ;;  %v297_v62 = vmax.f32 %v295_v48, %v296_v51  ;;  %v331_v63 = vadd.f32 %v324_v49, %v1615_v4  ;;  %v73_v48 = vld [vmem:[#allocation5] sm:$0xff]  ;;  %v79_v49 = vld [vmem:[#allocation5 + $0x30] sm:$0xff] }
  0x5c   :  { %v332_v0 = vadd.f32 %v328_v53, %v1617_v5  ;;  %v378_v1 = vrot.slane %v373_v59, %v1611_v2  ;;  %v315_v7 = vmax.f32 %v313_v52, %v314_v56  ;;  %v349_v8 = vadd.f32 %v342_v57, %v1615_v4  ;;  %p1499_p8 = pnand %p1498_p7, %p1492_p4 }
  0x5d   :  { %v350_v9 = vadd.f32 %v346_v58, %v1617_v5  ;;  %v382_v10 = vrot.slane %v373_v59, %v1613_v3  ;;  %v367_v12 = vadd.f32 %v360_v60, %v1615_v4  ;;  %v368_v13 = vadd.f32 %v364_v61, %v1617_v5  ;;  %v86_v60 = vld [vmem:[#allocation5 + $0x68] sm:$0xff]  ;;  %v92_v61 = vld [vmem:[#allocation5 + $0x98] sm:$0xff] }
  0x5e   :  { %640 = vmax.xlane.f32.xlu0 %v639_v50  ;;  %280 = vmax.xlane.f32.xlu1 %v279_v55  ;;  %v396_v14 = vrot.slane %v391_v6, %v1611_v2  ;;  %v400_v15 = vrot.slane %v391_v6, %v1613_v3  ;;  %v333_v16 = vmax.f32 %v331_v63, %v332_v0  ;;  %v517_v55 = vld [vmem:[#allocation7 + $0x16] ss:$8 sm:$0x3]  ;;  %vm652_vm6 = vcmask 48128  }
  0x5f   :  { %v385_v17 = vadd.f32 %v378_v1, %v1615_v4  ;;  %v351_v18 = vmax.f32 %v349_v8, %v350_v9  ;;  %v386_v19 = vadd.f32 %v382_v10, %v1617_v5  ;;  %v414_v20 = vrot.slane %v409_v11, %v1611_v2  ;;  %v91_v6 = vld [vmem:[#allocation5 + $0x90] sm:$0xff]  ;;  %v104_v8 = vld [vmem:[#allocation5 + $0xf8] sm:$0xff] }
  0x60   :  { %v418_v21 = vrot.slane %v409_v11, %v1613_v3  ;;  %v369_v24 = vmax.f32 %v367_v12, %v368_v13  ;;  %v403_v25 = vadd.f32 %v396_v14, %v1615_v4  ;;  %v404_v26 = vadd.f32 %v400_v15, %v1617_v5  ;;  %v535_v11 = vld [vmem:[#allocation7 + $0x17] ss:$8 sm:$0x3]  ;;  %v97_v14 = vld [vmem:[#allocation5 + $0xc0] sm:$0xff] }
  0x61   :  { %v432_v28 = vrot.slane %v427_v22, %v1611_v2  ;;  %v436_v29 = vrot.slane %v427_v22, %v1613_v3  ;;  %v450_v30 = vrot.slane %v445_v23, %v1611_v2  ;;  %v454_v31 = vrot.slane %v445_v23, %v1613_v3  ;;  %v103_v15 = vld [vmem:[#allocation5 + $0xf0] sm:$0xff] }
  0x62   :  { %298 = vmax.xlane.f32.xlu0 %v297_v62  ;;  %316 = vmax.xlane.f32.xlu1 %v315_v7  ;;  %v387_v33 = vmax.f32 %v385_v17, %v386_v19  ;;  %v421_v34 = vadd.f32 %v414_v20, %v1615_v4  ;;  %v422_v35 = vadd.f32 %v418_v21, %v1617_v5  ;;  %v85_v62 = vld [vmem:[#allocation5 + $0x60] sm:$0xff]  ;;  %v98_v7 = vld [vmem:[#allocation5 + $0xc8] sm:$0xff]  ;;  %v116_v17 = vld [vmem:[#allocation5 + $0x158] sm:$0xff]  ;;  %vm654_vm7 = vcmask 56320  }
  0x63   :  { %v468_v36 = vrot.slane %v463_v27, %v1611_v2  ;;  %v472_v37 = vrot.slane %v463_v27, %v1613_v3  ;;  %v405_v38 = vmax.f32 %v403_v25, %v404_v26  ;;  %v486_v39 = vrot.slane %v481_v32, %v1611_v2 }
  0x64   :  { %v490_v40 = vrot.slane %v481_v32, %v1613_v3  ;;  %v439_v43 = vadd.f32 %v432_v28, %v1615_v4  ;;  %v440_v44 = vadd.f32 %v436_v29, %v1617_v5  ;;  %v457_v45 = vadd.f32 %v450_v30, %v1615_v4  ;;  %v109_v28 = vld [vmem:[#allocation5 + $0x120] sm:$0xff]  ;;  %v115_v29 = vld [vmem:[#allocation5 + $0x150] sm:$0xff]  ;;  %v122_v30 = vld [vmem:[#allocation5 + $0x188] sm:$0xff] }
  0x65   :  { %v458_v46 = vadd.f32 %v454_v31, %v1617_v5  ;;  %v423_v50 = vmax.f32 %v421_v34, %v422_v35  ;;  %v1193_v51 = vpack.c.bf16 %v80_v42, %v74_v41  ;;  %v1195_v52 = vpack.c.bf16 %v79_v49, %v73_v48  ;;  %v128_v31 = vld [vmem:[#allocation5 + $0x1b8] sm:$0xff]  ;;  %v145_v49 = vld [vmem:[#allocation5 + $0x240] sm:$0xff] }
  0x66   :  { %334 = vmax.xlane.f32.xlu0 %v333_v16  ;;  %352 = vmax.xlane.f32.xlu1 %v351_v18  ;;  %v475_v53 = vadd.f32 %v468_v36, %v1615_v4  ;;  %v476_v54 = vadd.f32 %v472_v37, %v1617_v5  ;;  %v493_v56 = vadd.f32 %v486_v39, %v1615_v4  ;;  %v110_v16 = vld [vmem:[#allocation5 + $0x128] sm:$0xff]  ;;  %v121_v36 = vld [vmem:[#allocation5 + $0x180] sm:$0xff]  ;;  %v127_v37 = vld [vmem:[#allocation5 + $0x1b0] sm:$0xff]  ;;  %vm656_vm8 = vcmask 64512  }
  0x67   :  { %v494_v57 = vadd.f32 %v490_v40, %v1617_v5  ;;  %v504_v58 = vrot.slane %v499_v47, %v1611_v2  ;;  %v508_v59 = vrot.slane %v499_v47, %v1613_v3  ;;  %1194 = vmatprep.subr.bf16.mxu0 %v1193_v51  ;;  %v441_v63 = vmax.f32 %v439_v43, %v440_v44  ;;  %v140_v39 = vld [vmem:[#allocation5 + $0x218] sm:$0xff]  ;;  %v133_v43 = vld [vmem:[#allocation5 + $0x1e0] sm:$0xff]  ;;  %v139_v44 = vld [vmem:[#allocation5 + $0x210] sm:$0xff] }
  0x68   :  { %v459_v0 = vmax.f32 %v457_v45, %v458_v46  ;;  %1196 = vmatpush1.bf16.msra.mxu0 %v1195_v52  ;;  %v1197_v1 = vpack.c.bf16 %v92_v61, %v86_v60  ;;  %v522_v9 = vrot.slane %v517_v55, %v1611_v2  ;;  %v526_v10 = vrot.slane %v517_v55, %v1613_v3  ;;  %v146_v45 = vld [vmem:[#allocation5 + $0x248] sm:$0xff]  ;;  %v152_v46 = vld [vmem:[#allocation5 + $0x278] sm:$0xff]  ;;  %v157_v55 = vld [vmem:[#allocation5 + $0x2a0] sm:$0xff] }
  0x69   :  { %v1199_v12 = vpack.c.bf16 %v91_v6, %v85_v62  ;;  %v1201_v13 = vpack.c.bf16 %v104_v8, %v98_v7  ;;  %v477_v18 = vmax.f32 %v475_v53, %v476_v54  ;;  %v495_v19 = vmax.f32 %v493_v56, %v494_v57  ;;  %v158_v51 = vld [vmem:[#allocation5 + $0x2a8] sm:$0xff]  ;;  %v164_v52 = vld [vmem:[#allocation5 + $0x2d8] sm:$0xff]  ;;  %v163_v56 = vld [vmem:[#allocation5 + $0x2d0] sm:$0xff] }
  0x6a   :  { %370 = vmax.xlane.f32.xlu0 %v369_v24  ;;  %388 = vmax.xlane.f32.xlu1 %v387_v33  ;;  %v511_v20 = vadd.f32 %v504_v58, %v1615_v4  ;;  %v512_v21 = vadd.f32 %v508_v59, %v1617_v5  ;;  %v540_v22 = vrot.slane %v535_v11, %v1611_v2  ;;  %v170_v57 = vld [vmem:[#allocation5 + $0x308] sm:$0xff]  ;;  %v176_v58 = vld [vmem:[#allocation5 + $0x338] sm:$0xff]  ;;  %v169_v61 = vld [vmem:[#allocation5 + $0x300] sm:$0xff]  ;;  %vm658_vm9 = vcmask 72704  }
  0x6b   :  { %1198 = vmatprep.subr.bf16.mxu0 %v1197_v1  ;;  %v544_v23 = vrot.slane %v535_v11, %v1613_v3  ;;  %v1203_v24 = vpack.c.bf16 %v103_v15, %v97_v14  ;;  %v529_v25 = vadd.f32 %v522_v9, %v1615_v4  ;;  %v530_v26 = vadd.f32 %v526_v10, %v1617_v5  ;;  %v175_v62 = vld [vmem:[#allocation5 + $0x330] sm:$0xff]  ;;  %v181_v7 = vld [vmem:[#allocation5 + $0x360] sm:$0xff]  ;;  %v194_v9 = vld [vmem:[#allocation5 + $0x3c8] sm:$0xff] }
  0x6c   :  { %1200 = vmatpush1.bf16.msra.mxu0 %v1199_v12  ;;  %v1205_v27 = vpack.c.bf16 %v116_v17, %v110_v16  ;;  %v513_v32 = vmax.f32 %v511_v20, %v512_v21  ;;  %v547_v33 = vadd.f32 %v540_v22, %v1615_v4  ;;  %v1207_v3 = vpack.c.bf16 %v115_v29, %v109_v28  ;;  %v187_v8 = vld [vmem:[#allocation5 + $0x390] sm:$0xff]  ;;  %v200_v10 = vld [vmem:[#allocation5 + $0x3f8] sm:$0xff]  ;;  %v206_v15 = vld [vmem:[#allocation5 + $0x428] sm:$0xff] }
  0x6d   :  { %1202 = vmatprep.subr.bf16.mxu0 %v1201_v13  ;;  %v548_v2 = vadd.f32 %v544_v23, %v1617_v5  ;;  %v531_v34 = vmax.f32 %v529_v25, %v530_v26  ;;  %v1209_v35 = vpack.c.bf16 %v128_v31, %v122_v30  ;;  %v1211_v41 = vpack.c.bf16 %v127_v37, %v121_v36  ;;  %v193_v13 = vld [vmem:[#allocation5 + $0x3c0] sm:$0xff]  ;;  %v199_v14 = vld [vmem:[#allocation5 + $0x3f0] sm:$0xff]  ;;  %v212_v16 = vld [vmem:[#allocation5 + $0x458] sm:$0xff] }
  0x6e   :  { %406 = vmax.xlane.f32.xlu0 %v405_v38  ;;  %424 = vmax.xlane.f32.xlu1 %v423_v50  ;;  %v134_v38 = vld [vmem:[#allocation5 + $0x1e8] sm:$0xff]  ;;  %v1215_v47 = vpack.c.bf16 %v139_v44, %v133_v43  ;;  %v1217_v48 = vpack.c.bf16 %v152_v46, %v146_v45  ;;  %v151_v50 = vld [vmem:[#allocation5 + $0x270] sm:$0xff]  ;;  %v1221_v54 = vpack.c.bf16 %v164_v52, %v158_v51  ;;  %v683_v17 = vld [vmem:[#allocation8 + $0x8] sm:$0xff]  ;;  %vm660_vm10 = vcmask 80896  }
  0x6f   :  { %v549_v40 = vmax.f32 %v547_v33, %v548_v2  ;;  %v1213_v42 = vpack.c.bf16 %v140_v39, %v134_v38  ;;  %v1219_v53 = vpack.c.bf16 %v151_v50, %v145_v49  ;;  %v1223_v59 = vpack.c.bf16 %v163_v56, %v157_v55  ;;  %v688_v22 = vld [vmem:[#allocation8 + $0x30] sm:$0xff]  ;;  %v211_v25 = vld [vmem:[#allocation5 + $0x450] sm:$0xff]  ;;  %v218_v28 = vld [vmem:[#allocation5 + $0x488] sm:$0xff] }
  0x70   :  { %1204 = vmatpush1.bf16.msra.mxu0 %v1203_v24  ;;  %v1225_v60 = vpack.c.bf16 %v176_v58, %v170_v57  ;;  %v1227_v1 = vpack.c.bf16 %v175_v62, %v169_v61  ;;  %v1231_v11 = vpack.c.bf16 %v187_v8, %v181_v7  ;;  %v1233_v12 = vpack.c.bf16 %v200_v10, %v194_v9  ;;  %v205_v24 = vld [vmem:[#allocation5 + $0x420] sm:$0xff]  ;;  %v224_v29 = vld [vmem:[#allocation5 + $0x4b8] sm:$0xff]  ;;  %v694_v31 = vld [vmem:[#allocation8 + $0x60] sm:$0x1f] }
  0x71   :  { %1206 = vmatprep.subr.bf16.mxu0 %v1205_v27  ;;  %v1235_v20 = vpack.c.bf16 %v199_v14, %v193_v13  ;;  %v1237_v23 = vpack.c.bf16 %v212_v16, %v206_v15  ;;  %v695_v27 = vld [vmem:[#allocation8 + $0x68] sm:$0x1f]  ;;  %v1239_v30 = vpack.c.bf16 %v211_v25, %v205_v24  ;;  %v217_v33 = vld [vmem:[#allocation5 + $0x480] sm:$0xff]  ;;  %v223_v2 = vld [vmem:[#allocation5 + $0x4b0] sm:$0xff]  ;;  %vm662_vm11 = vcmask 89088  }
  0x72   :  { %442 = vmax.xlane.f32.xlu0 %v441_v63  ;;  %460 = vmax.xlane.f32.xlu1 %v459_v0  ;;  %v182_v63 = vld [vmem:[#allocation5 + $0x368] sm:$0xff]  ;;  %v188_v0 = vld [vmem:[#allocation5 + $0x398] sm:$0xff]  ;;  %v229_v37 = vld [vmem:[#allocation5 + $0x4e0] sm:$0xff]  ;;  %vm664_vm12 = vcmask 97280   ;;  %vm666_vm13 = vcmask 105472   ;;  %vm668_vm14 = vcmask 113664  }
  0x73   :  { %v1229_v6 = vpack.c.bf16 %v188_v0, %v182_v63  ;;  %v235_v38 = vld [vmem:[#allocation5 + $0x510] sm:$0xff]  ;;  %v242_v39 = vld [vmem:[#allocation5 + $0x548] sm:$0xff]  ;;  %v241_v43 = vld [vmem:[#allocation5 + $0x540] sm:$0xff]  ;;  %vm670_vm15 = vcmask 121856  }
  0x74   :  { %1208 = vmatpush1.bf16.msra.mxu0 %v1207_v3  ;;  %v230_v3 = vld [vmem:[#allocation5 + $0x4e8] sm:$0xff]  ;;  %v247_v44 = vld [vmem:[#allocation5 + $0x570] sm:$0xff]  ;;  %v260_v46 = vld [vmem:[#allocation5 + $0x5d8] sm:$0xff] }
  0x75   :  { %1210 = vmatprep.subr.bf16.mxu0 %v1209_v35  ;;  %v1243_v35 = vpack.c.bf16 %v223_v2, %v217_v33  ;;  %v254_v45 = vld [vmem:[#allocation5 + $0x5a8] sm:$0xff]  ;;  %v253_v49 = vld [vmem:[#allocation5 + $0x5a0] sm:$0xff]  ;;  %v259_v50 = vld [vmem:[#allocation5 + $0x5d0] sm:$0xff] }
  0x76   :  { %478 = vmax.xlane.f32.xlu0 %v477_v18  ;;  %496 = vmax.xlane.f32.xlu1 %v495_v19  ;;  %v689_v18 = vld [vmem:[#allocation8 + $0x38] sm:$0xff]  ;;  %v682_v19 = vld [vmem:[#allocation8] sm:$0xff]  ;;  %v84_v52 = vld [vmem:[#allocation5 + $0x58] sm:$0xff] }
  0x77   :  { %v1181_v21 = vpack.c.bf16 %v689_v18, %v683_v17  ;;  %v1183_v26 = vpack.c.bf16 %v688_v22, %v682_v19  ;;  %v78_v51 = vld [vmem:[#allocation5 + $0x28] sm:$0xff]  ;;  %v77_v55 = vld [vmem:[#allocation5 + $0x20] sm:$0xff]  ;;  %v83_v56 = vld [vmem:[#allocation5 + $0x50] sm:$0xff] }
  0x78   :  { %1212 = vmatpush1.bf16.msra.mxu0 %v1211_v41  ;;  %v1247_v41 = vpack.c.bf16 %v235_v38, %v229_v37  ;;  %v90_v57 = vld [vmem:[#allocation5 + $0x88] sm:$0xff]  ;;  %v96_v58 = vld [vmem:[#allocation5 + $0xb8] sm:$0xff]  ;;  %v89_v61 = vld [vmem:[#allocation5 + $0x80] sm:$0xff] }
  0x79   :  { %1214 = vmatprep.subr.bf16.mxu0 %v1213_v42  ;;  %1182 = vmatprep.subr.bf16.mxu1 %v1181_v21  ;;  %v95_v62 = vld [vmem:[#allocation5 + $0xb0] sm:$0xff]  ;;  %v102_v63 = vld [vmem:[#allocation5 + $0xe8] sm:$0xff]  ;;  %v108_v0 = vld [vmem:[#allocation5 + $0x118] sm:$0xff] }
  0x7a   :  { %514 = vmax.xlane.f32.xlu0 %v513_v32  ;;  %532 = vmax.xlane.f32.xlu1 %v531_v34  ;;  %v1241_v32 = vpack.c.bf16 %v224_v29, %v218_v28  ;;  %v236_v34 = vld [vmem:[#allocation5 + $0x518] sm:$0xff]  ;;  %v101_v7 = vld [vmem:[#allocation5 + $0xe0] sm:$0xff]  ;;  %v107_v8 = vld [vmem:[#allocation5 + $0x110] sm:$0xff] }
  0x7b   :  { %1184 = vmatpush1.bf16.msra.mxu1 %v1183_v26  ;;  %v1245_v36 = vpack.c.bf16 %v236_v34, %v230_v3  ;;  %v114_v9 = vld [vmem:[#allocation5 + $0x148] sm:$0xff]  ;;  %v120_v10 = vld [vmem:[#allocation5 + $0x178] sm:$0xff]  ;;  %v113_v13 = vld [vmem:[#allocation5 + $0x140] sm:$0xff] }
  0x7c   :  { %1216 = vmatpush1.bf16.msra.mxu0 %v1215_v47  ;;  %1172 = vmatprep.subr.msk.mxu1 %vm704_vm0, %v695_v27  ;;  %v1251_v47 = vpack.c.bf16 %v247_v44, %v241_v43  ;;  %v119_v14 = vld [vmem:[#allocation5 + $0x170] sm:$0xff]  ;;  %v126_v15 = vld [vmem:[#allocation5 + $0x1a8] sm:$0xff]  ;;  %v132_v16 = vld [vmem:[#allocation5 + $0x1d8] sm:$0xff] }
  0x7d   :  { %1218 = vmatprep.subr.bf16.mxu0 %v1217_v48  ;;  %v1253_v48 = vpack.c.bf16 %v260_v46, %v254_v45  ;;  %v1335_v17 = vpack.c.bf16 %v119_v14, %v113_v13  ;;  %v1337_v18 = vpack.c.bf16 %v132_v16, %v126_v15  ;;  %v125_v19 = vld [vmem:[#allocation5 + $0x1a0] sm:$0xff]  ;;  %v144_v21 = vld [vmem:[#allocation5 + $0x238] sm:$0xff]  ;;  %v143_v25 = vld [vmem:[#allocation5 + $0x230] sm:$0xff]  ;;  %v1529_v15 = vmov 0.0  }
  0x7e   :  { %550 = vmax.xlane.f32.xlu0 %v549_v40  ;;  %v248_v40 = vld [vmem:[#allocation5 + $0x578] sm:$0xff]  ;;  %v137_v24 = vld [vmem:[#allocation5 + $0x200] sm:$0xff]  ;;  %v150_v26 = vld [vmem:[#allocation5 + $0x268] sm:$0xff]  ;;  %787 = vmatprep.mubr.f32.mxu1 %v1529_v15 }
  0x7f   :  { %1173 = vmatpush1.msk.msra.mxu1 %vm704_vm0, %v694_v31  ;;  %v1249_v42 = vpack.c.bf16 %v248_v40, %v242_v39  ;;  %v156_v27 = vld [vmem:[#allocation5 + $0x298] sm:$0xff]  ;;  %v1343_v28 = vpack.c.bf16 %v143_v25, %v137_v24  ;;  %v155_v31 = vld [vmem:[#allocation5 + $0x290] sm:$0xff]  ;;  %v161_v34 = vld [vmem:[#allocation5 + $0x2c0] sm:$0xff] }
  0x80   :  { %1220 = vmatpush1.bf16.msra.mxu0 %v1219_v53  ;;  %v1255_v53 = vpack.c.bf16 %v259_v50, %v253_v49  ;;  %v1345_v29 = vpack.c.bf16 %v156_v27, %v150_v26  ;;  %v168_v33 = vld [vmem:[#allocation5 + $0x2f8] sm:$0xff]  ;;  %v173_v40 = vld [vmem:[#allocation5 + $0x320] sm:$0xff]  ;;  %v239_v14 = vld [vmem:[#allocation5 + $0x530] sm:$0xff] }
  0x81   :  { %1222 = vmatprep.subr.bf16.mxu0 %v1221_v54  ;;  %v1321_v54 = vpack.c.bf16 %v84_v52, %v78_v51  ;;  %v180_v37 = vld [vmem:[#allocation5 + $0x358] sm:$0xff]  ;;  %v185_v46 = vld [vmem:[#allocation5 + $0x380] sm:$0xff]  ;;  %v258_v24 = vld [vmem:[#allocation5 + $0x5c8] sm:$0xff] }
  0x82   :  { %v192_v43 = vld [vmem:[#allocation5 + $0x3b8] sm:$0xff]  ;;  %v197_v52 = vld [vmem:[#allocation5 + $0x3e0] sm:$0xff] }
  0x83   :  { %v204_v49 = vld [vmem:[#allocation5 + $0x418] sm:$0xff]  ;;  %v233_v13 = vld [vmem:[#allocation5 + $0x500] sm:$0xff] }
  0x84   :  { %1224 = vmatpush1.bf16.msra.mxu0 %v1223_v59  ;;  %v1323_v59 = vpack.c.bf16 %v83_v56, %v77_v55  ;;  %v216_v55 = vld [vmem:[#allocation5 + $0x478] sm:$0xff]  ;;  %v1375_v16 = vpack.c.bf16 %v239_v14, %v233_v13  ;;  %v686_v13 = vld [vmem:[#allocation8 + $0x20] sm:$0xff]  ;;  %v692_v14 = vld [vmem:[#allocation8 + $0x50] sm:$0xff] }
  0x85   :  { %1226 = vmatprep.subr.bf16.mxu0 %v1225_v60  ;;  %v1325_v60 = vpack.c.bf16 %v96_v58, %v90_v57  ;;  %v209_v58 = vld [vmem:[#allocation5 + $0x440] sm:$0xff]  ;;  %v264_v25 = vld [vmem:[#allocation5 + $0x5f8] sm:$0xff] }
  0x86   :  { %v1381_v27 = vpack.c.bf16 %v264_v25, %v258_v24  ;;  %v94_v24 = vld [vmem:[#allocation5 + $0xa8] sm:$0xff]  ;;  %v698_v25 = vld [vmem:[#allocation8 + $0x80] sm:$0x1f] }
  0x88   :  { %1228 = vmatpush1.bf16.msra.mxu0 %v1227_v1  ;;  %v1327_v1 = vpack.c.bf16 %v95_v62, %v89_v61  ;;  %v228_v61 = vld [vmem:[#allocation5 + $0x4d8] sm:$0xff] }
  0x89   :  { %1230 = vmatprep.subr.bf16.mxu0 %v1229_v6  ;;  %v1329_v6 = vpack.c.bf16 %v108_v0, %v102_v63  ;;  %v221_v0 = vld [vmem:[#allocation5 + $0x4a0] sm:$0xff] }
  0x8c   :  { %1232 = vmatpush1.bf16.msra.mxu0 %v1231_v11  ;;  %v1331_v11 = vpack.c.bf16 %v107_v8, %v101_v7  ;;  %v685_v7 = vld [vmem:[#allocation8 + $0x18] sm:$0xff]  ;;  %v691_v8 = vld [vmem:[#allocation8 + $0x48] sm:$0xff] }
  0x8d   :  { %1234 = vmatprep.subr.bf16.mxu0 %v1233_v12  ;;  %v1333_v12 = vpack.c.bf16 %v120_v10, %v114_v9  ;;  %v234_v9 = vld [vmem:[#allocation5 + $0x508] sm:$0xff]  ;;  %v1185_v10 = vpack.c.bf16 %v691_v8, %v685_v7 }
  0x8f   :  { %1186 = vmatprep.subr.bf16.mxu1 %v1185_v10  ;;  %v697_v10 = vld [vmem:[#allocation8 + $0x78] sm:$0x1f] }
  0x90   :  { %1236 = vmatpush1.bf16.msra.mxu0 %v1235_v20  ;;  %v138_v20 = vld [vmem:[#allocation5 + $0x208] sm:$0xff] }
  0x91   :  { %1238 = vmatprep.subr.bf16.mxu0 %v1237_v23  ;;  %v1341_v23 = vpack.c.bf16 %v144_v21, %v138_v20  ;;  %v245_v20 = vld [vmem:[#allocation5 + $0x560] sm:$0xff]  ;;  %v251_v21 = vld [vmem:[#allocation5 + $0x590] sm:$0xff] }
  0x94   :  { %1240 = vmatpush1.bf16.msra.mxu0 %v1239_v30  ;;  %v149_v30 = vld [vmem:[#allocation5 + $0x260] sm:$0xff] }
  0x95   :  { %1242 = vmatprep.subr.bf16.mxu0 %v1241_v32  ;;  %v162_v32 = vld [vmem:[#allocation5 + $0x2c8] sm:$0xff]  ;;  %v1347_v2 = vpack.c.bf16 %v155_v31, %v149_v30 }
  0x96   :  { %v1349_v3 = vpack.c.bf16 %v168_v33, %v162_v32 }
  0x98   :  { %1244 = vmatpush1.bf16.msra.mxu0 %v1243_v35  ;;  %v167_v35 = vld [vmem:[#allocation5 + $0x2f0] sm:$0xff] }
  0x99   :  { %1246 = vmatprep.subr.bf16.mxu0 %v1245_v36  ;;  %v174_v36 = vld [vmem:[#allocation5 + $0x328] sm:$0xff]  ;;  %v1351_v38 = vpack.c.bf16 %v167_v35, %v161_v34 }
  0x9a   :  { %v1353_v39 = vpack.c.bf16 %v180_v37, %v174_v36 }
  0x9c   :  { %1248 = vmatpush1.bf16.msra.mxu0 %v1247_v41  ;;  %v179_v41 = vld [vmem:[#allocation5 + $0x350] sm:$0xff] }
  0x9d   :  { %1250 = vmatprep.subr.bf16.mxu0 %v1249_v42  ;;  %v186_v42 = vld [vmem:[#allocation5 + $0x388] sm:$0xff]  ;;  %v1355_v44 = vpack.c.bf16 %v179_v41, %v173_v40 }
  0x9e   :  { %v1357_v45 = vpack.c.bf16 %v192_v43, %v186_v42 }
  0xa0   :  { %1252 = vmatpush1.bf16.msra.mxu0 %v1251_v47  ;;  %v191_v47 = vld [vmem:[#allocation5 + $0x3b0] sm:$0xff] }
  0xa1   :  { %1254 = vmatprep.subr.bf16.mxu0 %v1253_v48  ;;  %v198_v48 = vld [vmem:[#allocation5 + $0x3e8] sm:$0xff]  ;;  %v1359_v50 = vpack.c.bf16 %v191_v47, %v185_v46 }
  0xa2   :  { %v1361_v51 = vpack.c.bf16 %v204_v49, %v198_v48 }
  0xa4   :  { %1256 = vmatpush1.bf16.msra.mxu0 %v1255_v53  ;;  %v203_v53 = vld [vmem:[#allocation5 + $0x410] sm:$0xff] }
  0xa5   :  { %1322 = vmatprep.subr.bf16.mxu0 %v1321_v54  ;;  %v210_v54 = vld [vmem:[#allocation5 + $0x448] sm:$0xff]  ;;  %v1363_v56 = vpack.c.bf16 %v203_v53, %v197_v52 }
  0xa6   :  { %v1365_v57 = vpack.c.bf16 %v216_v55, %v210_v54 }
  0xa7   :  { %1001 = vmatmul.mubr.f32.vlgmr.msra.gmra.mrb[0].mxu0 %v1615_v4 }
  0xa8   :  { %1324 = vmatpush1.bf16.msra.mxu0 %v1323_v59  ;;  %1142 = vmatprep.mubr.f32.mxu0 %v1617_v5  ;;  %v131_v5 = vld [vmem:[#allocation5 + $0x1d0] sm:$0xff] }
  0xa9   :  { %1326 = vmatprep.subr.bf16.mxu0 %v1325_v60  ;;  %v1339_v22 = vpack.c.bf16 %v131_v5, %v125_v19  ;;  %v215_v59 = vld [vmem:[#allocation5 + $0x470] sm:$0xff]  ;;  %v222_v60 = vld [vmem:[#allocation5 + $0x4a8] sm:$0xff] }
  0xaa   :  { %v1367_v62 = vpack.c.bf16 %v215_v59, %v209_v58  ;;  %v1369_v63 = vpack.c.bf16 %v228_v61, %v222_v60 }
  0xac   :  { %1328 = vmatpush1.bf16.msra.mxu0 %v1327_v1  ;;  %v227_v1 = vld [vmem:[#allocation5 + $0x4d0] sm:$0xff] }
  0xad   :  { %1330 = vmatprep.subr.bf16.mxu0 %v1329_v6  ;;  %v1371_v6 = vpack.c.bf16 %v227_v1, %v221_v0 }
  0xb0   :  { %1332 = vmatpush1.bf16.msra.mxu0 %v1331_v11  ;;  %v240_v11 = vld [vmem:[#allocation5 + $0x538] sm:$0xff] }
  0xb1   :  { %1334 = vmatprep.subr.bf16.mxu0 %v1333_v12  ;;  %v1373_v12 = vpack.c.bf16 %v240_v11, %v234_v9  ;;  %v687_v11 = vld [vmem:[#allocation8 + $0x28] sm:$0xff] }
  0xb4   :  { %1336 = vmatpush1.bf16.msra.mxu0 %v1335_v17  ;;  %v246_v17 = vld [vmem:[#allocation5 + $0x568] sm:$0xff] }
  0xb5   :  { %1338 = vmatprep.subr.bf16.mxu0 %v1337_v18  ;;  %v252_v18 = vld [vmem:[#allocation5 + $0x598] sm:$0xff] }
  0xb6   :  { %v1377_v5 = vpack.c.bf16 %v252_v18, %v246_v17  ;;  %v1191_v18 = vpack.c.bf16 %v692_v14, %v686_v13  ;;  %v183_v14 = vld [vmem:[#allocation5 + $0x370] sm:$0xff] }
  0xb8   :  { %1340 = vmatpush1.bf16.msra.mxu0 %v1339_v22 }
  0xb9   :  { %1342 = vmatprep.subr.bf16.mxu0 %v1341_v23  ;;  %v1379_v23 = vpack.c.bf16 %v251_v21, %v245_v20  ;;  %v82_v20 = vld [vmem:[#allocation5 + $0x48] sm:$0xff]  ;;  %v75_v21 = vld [vmem:[#allocation5 + $0x10] sm:$0xff] }
  0xbc   :  { %1344 = vmatpush1.bf16.msra.mxu0 %v1343_v28  ;;  %v257_v28 = vld [vmem:[#allocation5 + $0x5c0] sm:$0xff] }
  0xbd   :  { %1346 = vmatprep.subr.bf16.mxu0 %v1345_v29  ;;  %v263_v29 = vld [vmem:[#allocation5 + $0x5f0] sm:$0xff] }
  0xbe   :  { %v1383_v32 = vpack.c.bf16 %v263_v29, %v257_v28  ;;  %v87_v29 = vld [vmem:[#allocation5 + $0x70] sm:$0xff] }
  0xc0   :  { %1348 = vmatpush1.bf16.msra.mxu0 %v1347_v2 }
  0xc1   :  { %1350 = vmatprep.subr.bf16.mxu0 %v1349_v3 }
  0xc4   :  { %1352 = vmatpush1.bf16.msra.mxu0 %v1351_v38 }
  0xc5   :  { %1354 = vmatprep.subr.bf16.mxu0 %v1353_v39 }
  0xc8   :  { %1356 = vmatpush1.bf16.msra.mxu0 %v1355_v44 }
  0xc9   :  { %1358 = vmatprep.subr.bf16.mxu0 %v1357_v45 }
  0xcc   :  { %1360 = vmatpush1.bf16.msra.mxu0 %v1359_v50 }
  0xcd   :  { %1362 = vmatprep.subr.bf16.mxu0 %v1361_v51 }
  0xd0   :  { %1364 = vmatpush1.bf16.msra.mxu0 %v1363_v56 }
  0xd1   :  { %1366 = vmatprep.subr.bf16.mxu0 %v1365_v57 }
  0xd4   :  { %1368 = vmatpush1.bf16.msra.mxu0 %v1367_v62  ;;  %v684_v62 = vld [vmem:[#allocation8 + $0x10] sm:$0xff] }
  0xd5   :  { %1370 = vmatprep.subr.bf16.mxu0 %v1369_v63  ;;  %v690_v63 = vld [vmem:[#allocation8 + $0x40] sm:$0xff] }
  0xd8   :  { %1372 = vmatpush1.bf16.msra.mxu0 %v1371_v6  ;;  %v1187_v6 = vpack.c.bf16 %v690_v63, %v684_v62  ;;  %v159_v62 = vld [vmem:[#allocation5 + $0x2b0] sm:$0xff]  ;;  %v165_v63 = vld [vmem:[#allocation5 + $0x2e0] sm:$0xff] }
  0xd9   :  { %1374 = vmatprep.subr.bf16.mxu0 %v1373_v12  ;;  %v693_v12 = vld [vmem:[#allocation8 + $0x58] sm:$0xff] }
  0xda   :  { %v1189_v17 = vpack.c.bf16 %v693_v12, %v687_v11  ;;  %v190_v11 = vld [vmem:[#allocation5 + $0x3a8] sm:$0xff] }
  0xdc   :  { %1376 = vmatpush1.bf16.msra.mxu0 %v1375_v16  ;;  %v696_v16 = vld [vmem:[#allocation8 + $0x70] sm:$0x1f] }
  0xdd   :  { %1378 = vmatprep.subr.bf16.mxu0 %v1377_v5  ;;  %v76_v5 = vld [vmem:[#allocation5 + $0x18] sm:$0xff] }
  0xe0   :  { %1380 = vmatpush1.bf16.msra.mxu0 %v1379_v23  ;;  %v88_v23 = vld [vmem:[#allocation5 + $0x78] sm:$0xff] }
  0xe1   :  { %1382 = vmatprep.subr.bf16.mxu0 %v1381_v27  ;;  %v1261_v28 = vpack.c.bf16 %v94_v24, %v88_v23  ;;  %v214_v23 = vld [vmem:[#allocation5 + $0x468] sm:$0xff] }
  0xe3   :  { %v569_v19 = vpop.xlane.xlu0 %568  ;;  %v605_v22 = vpop.xlane.xlu1 %604 }
  0xe4   :  { %1384 = vmatpush1.bf16.msra.mxu0 %v1383_v32  ;;  %v106_v32 = vld [vmem:[#allocation5 + $0x108] sm:$0xff] }
  0xe7   :  { %v587_v26 = vpop.xlane.xlu0 %586  ;;  %v623_v31 = vpop.xlane.xlu1 %622  ;;  %1143 = vmatmul.mubr.f32.vlgmr.msra.gmra.mrb[2].mxu0 %v1615_v4 }
  0xe8   :  { %v672_v30 = vsel %vm642_vm1, %v569_v19, %v587_v26  ;;  %v699_v19 = vld [vmem:[#allocation8 + $0x88] sm:$0x1f]  ;;  %v1257_v26 = vpack.c.bf16 %v82_v20, %v76_v5  ;;  %v195_v20 = vld [vmem:[#allocation5 + $0x3d0] sm:$0xff] }
  0xe9   :  { %v673_v33 = vsel %vm644_vm2, %v672_v30, %v605_v22  ;;  %v81_v22 = vld [vmem:[#allocation5 + $0x40] sm:$0xff] }
  0xea   :  { %v674_v2 = vsel %vm646_vm3, %v673_v33, %v623_v31  ;;  %v1259_v27 = vpack.c.bf16 %v81_v22, %v75_v21  ;;  %v93_v30 = vld [vmem:[#allocation5 + $0xa0] sm:$0xff]  ;;  %v100_v31 = vld [vmem:[#allocation5 + $0xd8] sm:$0xff] }
  0xeb   :  { %v641_v3 = vpop.xlane.xlu0 %640  ;;  %v281_v35 = vpop.xlane.xlu1 %280  ;;  %v1263_v33 = vpack.c.bf16 %v93_v30, %v87_v29  ;;  %v201_v21 = vld [vmem:[#allocation5 + $0x400] sm:$0xff]  ;;  %v208_v22 = vld [vmem:[#allocation5 + $0x438] sm:$0xff]  ;;  %v226_v29 = vld [vmem:[#allocation5 + $0x4c8] sm:$0xff] }
  0xec   :  { %v675_v34 = vsel %vm648_vm4, %v674_v2, %v641_v3  ;;  %v1265_v2 = vpack.c.bf16 %v106_v32, %v100_v31  ;;  %v99_v3 = vld [vmem:[#allocation5 + $0xd0] sm:$0xff]  ;;  %v1299_v24 = vpack.c.bf16 %v201_v21, %v195_v20 }
  0xed   :  { %677 = vrot.lane.b32.xlu1 %v675_v34, %s1527_s24  ;;  %v105_v34 = vld [vmem:[#allocation5 + $0x100] sm:$0xff]  ;;  %v219_v32 = vld [vmem:[#allocation5 + $0x490] sm:$0xff] }
  0xef   :  { %v299_v36 = vpop.xlane.xlu0 %298  ;;  %v317_v38 = vpop.xlane.xlu1 %316 }
  0xf0   :  { %v643_v37 = vsel %vm642_vm1, %v281_v35, %v299_v36  ;;  %vm680_vm1 = vcmask 130048   ;;  %v112_v35 = vld [vmem:[#allocation5 + $0x138] sm:$0xff]  ;;  %v118_v36 = vld [vmem:[#allocation5 + $0x168] sm:$0xff] }
  0xf1   :  { %v645_v39 = vsel %vm644_vm2, %v643_v37, %v317_v38  ;;  %vm700_vm2 = vcmask 171008   ;;  %v1267_v37 = vpack.c.bf16 %v105_v34, %v99_v3  ;;  %v1269_v38 = vpack.c.bf16 %v118_v36, %v112_v35  ;;  %v231_v35 = vld [vmem:[#allocation5 + $0x4f0] sm:$0xff]  ;;  %v237_v36 = vld [vmem:[#allocation5 + $0x520] sm:$0xff] }
  0xf3   :  { %v335_v40 = vpop.xlane.xlu0 %334  ;;  %v353_v42 = vpop.xlane.xlu1 %352 }
  0xf4   :  { %v647_v41 = vsel %vm646_vm3, %v645_v39, %v335_v40  ;;  %v111_v39 = vld [vmem:[#allocation5 + $0x130] sm:$0xff]  ;;  %v117_v40 = vld [vmem:[#allocation5 + $0x160] sm:$0xff] }
  0xf5   :  { %v649_v43 = vsel %vm648_vm4, %v647_v41, %v353_v42  ;;  %v124_v41 = vld [vmem:[#allocation5 + $0x198] sm:$0xff]  ;;  %v130_v42 = vld [vmem:[#allocation5 + $0x1c8] sm:$0xff] }
  0xf7   :  { %v371_v44 = vpop.xlane.xlu0 %370  ;;  %v389_v46 = vpop.xlane.xlu1 %388 }
  0xf8   :  { %v651_v45 = vsel %vm650_vm5, %v649_v43, %v371_v44  ;;  %v1271_v43 = vpack.c.bf16 %v117_v40, %v111_v39  ;;  %v1273_v44 = vpack.c.bf16 %v130_v42, %v124_v41  ;;  %v1311_v39 = vpack.c.bf16 %v237_v36, %v231_v35  ;;  %v243_v41 = vld [vmem:[#allocation5 + $0x550] sm:$0xff]  ;;  %v249_v42 = vld [vmem:[#allocation5 + $0x580] sm:$0xff] }
  0xf9   :  { %v653_v47 = vsel %vm652_vm6, %v651_v45, %v389_v46  ;;  %v123_v45 = vld [vmem:[#allocation5 + $0x190] sm:$0xff]  ;;  %v129_v46 = vld [vmem:[#allocation5 + $0x1c0] sm:$0xff] }
  0xfb   :  { %v407_v4 = vpop.xlane.xlu0 %406  ;;  %v425_v49 = vpop.xlane.xlu1 %424 }
  0xfc   :  { %v655_v48 = vsel %vm654_vm7, %v653_v47, %v407_v4  ;;  %v136_v47 = vld [vmem:[#allocation5 + $0x1f8] sm:$0xff]  ;;  %v142_v4 = vld [vmem:[#allocation5 + $0x228] sm:$0xff] }
  0xfd   :  { %v657_v50 = vsel %vm656_vm8, %v655_v48, %v425_v49  ;;  %v1275_v48 = vpack.c.bf16 %v129_v46, %v123_v45  ;;  %v1277_v49 = vpack.c.bf16 %v142_v4, %v136_v47  ;;  %v1315_v45 = vpack.c.bf16 %v249_v42, %v243_v41  ;;  %v255_v47 = vld [vmem:[#allocation5 + $0x5b0] sm:$0xff]  ;;  %v261_v4 = vld [vmem:[#allocation5 + $0x5e0] sm:$0xff] }
  0xff   :  { %v443_v51 = vpop.xlane.xlu0 %442  ;;  %v461_v53 = vpop.xlane.xlu1 %460 }
 0x100   :  { %v659_v52 = vsel %vm658_vm9, %v657_v50, %v443_v51  ;;  %v135_v50 = vld [vmem:[#allocation5 + $0x1f0] sm:$0xff]  ;;  %v141_v51 = vld [vmem:[#allocation5 + $0x220] sm:$0xff] }
 0x101   :  { %v661_v54 = vsel %vm660_vm10, %v659_v52, %v461_v53  ;;  %v148_v52 = vld [vmem:[#allocation5 + $0x258] sm:$0xff]  ;;  %v154_v53 = vld [vmem:[#allocation5 + $0x288] sm:$0xff] }
 0x103   :  { %v479_v55 = vpop.xlane.xlu0 %478  ;;  %v497_v57 = vpop.xlane.xlu1 %496 }
 0x104   :  { %v663_v56 = vsel %vm662_vm11, %v661_v54, %v479_v55  ;;  %v1279_v54 = vpack.c.bf16 %v141_v51, %v135_v50  ;;  %v1281_v55 = vpack.c.bf16 %v154_v53, %v148_v52 }
 0x105   :  { %v665_v58 = vsel %vm664_vm12, %v663_v56, %v497_v57  ;;  %v147_v56 = vld [vmem:[#allocation5 + $0x250] sm:$0xff]  ;;  %v153_v57 = vld [vmem:[#allocation5 + $0x280] sm:$0xff] }
 0x107   :  { %v515_v59 = vpop.xlane.xlu0 %514  ;;  %v533_v61 = vpop.xlane.xlu1 %532 }
 0x108   :  { %v667_v60 = vsel %vm666_vm13, %v665_v58, %v515_v59  ;;  %v160_v58 = vld [vmem:[#allocation5 + $0x2b8] sm:$0xff]  ;;  %v166_v59 = vld [vmem:[#allocation5 + $0x2e8] sm:$0xff] }
 0x109   :  { %v669_v0 = vsel %vm668_vm14, %v667_v60, %v533_v61  ;;  %v1283_v60 = vpack.c.bf16 %v153_v57, %v147_v56  ;;  %v1285_v61 = vpack.c.bf16 %v166_v59, %v160_v58 }
 0x10b   :  { %v551_v1 = vpop.xlane.xlu0 %550 }
 0x10c   :  { %v671_v7 = vsel %vm670_vm15, %v669_v0, %v551_v1  ;;  %v172_v0 = vld [vmem:[#allocation5 + $0x318] sm:$0xff]  ;;  %v178_v1 = vld [vmem:[#allocation5 + $0x348] sm:$0xff] }
 0x15f   :  { %v678_v8 = vpop.permute.xlu1 %677 }
 0x160   :  { %v681_v9 = vsel %vm680_vm1, %v671_v7, %v678_v8  ;;  %v1289_v7 = vpack.c.bf16 %v178_v1, %v172_v0  ;;  %v171_v8 = vld [vmem:[#allocation5 + $0x310] sm:$0xff] }
 0x161   :  { %1174 = vmatmul.mubr.msk.f32.vlgmr.msra.gmra.mrb[0].mxu1 %vm700_vm2, %v681_v9 }
 0x162   :  { %1188 = vmatpush1.bf16.msra.mxu1 %v1187_v6  ;;  %858 = vmatprep.mubr.f32.mxu1 %v1529_v15  ;;  %v1287_v6 = vpack.c.bf16 %v165_v63, %v159_v62 }
 0x163   :  { %1175 = vmatprep.subr.msk.mxu1 %vm704_vm0, %v697_v10  ;;  %v184_v10 = vld [vmem:[#allocation5 + $0x378] sm:$0xff] }
 0x164   :  { %v1293_v13 = vpack.c.bf16 %v190_v11, %v184_v10 }
 0x166   :  { %1176 = vmatpush1.msk.msra.mxu1 %vm704_vm0, %v696_v16  ;;  %v189_v16 = vld [vmem:[#allocation5 + $0x3a0] sm:$0xff] }
 0x167   :  { %1177 = vmatmul.mubr.msk.f32.vlgmr.msra.gmra.mrb[2].mxu1 %vm700_vm2, %v681_v9  ;;  %1190 = vmatprep.subr.bf16.mxu1 %v1189_v17  ;;  %v196_v17 = vld [vmem:[#allocation5 + $0x3d8] sm:$0xff] }
 0x168   :  { %1192 = vmatpush1.bf16.msra.mxu1 %v1191_v18  ;;  %929 = vmatprep.mubr.f32.mxu1 %v1529_v15  ;;  %v1401_v15 = vld [vmem:[#allocation2 + $0x8] sm:$0xff]  ;;  %v202_v18 = vld [vmem:[#allocation5 + $0x408] sm:$0xff] }
 0x169   :  { %1178 = vmatprep.subr.msk.mxu1 %vm704_vm0, %v699_v19  ;;  %v1295_v19 = vpack.c.bf16 %v189_v16, %v183_v14  ;;  %v1297_v5 = vpack.c.bf16 %v202_v18, %v196_v17 }
 0x16c   :  { %1179 = vmatpush1.msk.msra.mxu1 %vm704_vm0, %v698_v25  ;;  %v1301_v25 = vpack.c.bf16 %v214_v23, %v208_v22 }
 0x16d   :  { %1180 = vmatmul.mubr.msk.f32.vlgmr.msra.gmra.mrb[4].mxu1 %vm700_vm2, %v681_v9  ;;  %1258 = vmatprep.subr.bf16.mxu1 %v1257_v26  ;;  %v177_v9 = vld [vmem:[#allocation5 + $0x340] sm:$0xff]  ;;  %v207_v26 = vld [vmem:[#allocation5 + $0x430] sm:$0xff] }
 0x16e   :  { %1260 = vmatpush1.bf16.msra.mxu1 %v1259_v27  ;;  %1071 = vmatprep.mubr.f32.mxu1 %v1401_v15  ;;  %v1291_v12 = vpack.c.bf16 %v177_v9, %v171_v8  ;;  %v213_v27 = vld [vmem:[#allocation5 + $0x460] sm:$0xff]  ;;  %v232_v15 = vld [vmem:[#allocation5 + $0x4f8] sm:$0xff] }
 0x16f   :  { %1262 = vmatprep.subr.bf16.mxu1 %v1261_v28  ;;  %v220_v28 = vld [vmem:[#allocation5 + $0x498] sm:$0xff]  ;;  %v1303_v30 = vpack.c.bf16 %v213_v27, %v207_v26 }
 0x170   :  { %v1305_v31 = vpack.c.bf16 %v226_v29, %v220_v28 }
 0x172   :  { %1264 = vmatpush1.bf16.msra.mxu1 %v1263_v33  ;;  %v225_v33 = vld [vmem:[#allocation5 + $0x4c0] sm:$0xff] }
 0x173   :  { %1266 = vmatprep.subr.bf16.mxu1 %v1265_v2  ;;  %v238_v2 = vld [vmem:[#allocation5 + $0x528] sm:$0xff]  ;;  %v1307_v3 = vpack.c.bf16 %v225_v33, %v219_v32 }
 0x174   :  { %v1309_v34 = vpack.c.bf16 %v238_v2, %v232_v15 }
 0x176   :  { %1268 = vmatpush1.bf16.msra.mxu1 %v1267_v37  ;;  %v244_v37 = vld [vmem:[#allocation5 + $0x558] sm:$0xff] }
 0x177   :  { %1270 = vmatprep.subr.bf16.mxu1 %v1269_v38  ;;  %v250_v38 = vld [vmem:[#allocation5 + $0x588] sm:$0xff] }
 0x178   :  { %v1313_v40 = vpack.c.bf16 %v250_v38, %v244_v37 }
 0x17a   :  { %1272 = vmatpush1.bf16.msra.mxu1 %v1271_v43  ;;  %v256_v43 = vld [vmem:[#allocation5 + $0x5b8] sm:$0xff]  ;;  %v1002_v50 = vpop.f32.mrb[0].mxu0 }
 0x17b   :  { %1274 = vmatprep.subr.bf16.mxu1 %v1273_v44  ;;  %v262_v44 = vld [vmem:[#allocation5 + $0x5e8] sm:$0xff]  ;;  %v1004_v51 = vpop.f32.mrb[1].mxu0 }
 0x17c   :  { %v1317_v46 = vpack.c.bf16 %v262_v44, %v256_v43 }
 0x17e   :  { %1276 = vmatpush1.bf16.msra.mxu1 %v1275_v48  ;;  %v1319_v48 = vpack.c.bf16 %v261_v4, %v255_v47 }
 0x17f   :  { %1278 = vmatprep.subr.bf16.mxu1 %v1277_v49  ;;  %v1402_v49 = vld [vmem:[#allocation2] sm:$0xff] }
 0x182   :  { %1280 = vmatpush1.bf16.msra.mxu1 %v1279_v54 }
 0x183   :  { %1282 = vmatprep.subr.bf16.mxu1 %v1281_v55 }
 0x186   :  { %1284 = vmatpush1.bf16.msra.mxu1 %v1283_v60 }
 0x187   :  { %1286 = vmatprep.subr.bf16.mxu1 %v1285_v61 }
 0x18a   :  { %1288 = vmatpush1.bf16.msra.mxu1 %v1287_v6 }
 0x18b   :  { %1290 = vmatprep.subr.bf16.mxu1 %v1289_v7 }
 0x18e   :  { %1292 = vmatpush1.bf16.msra.mxu1 %v1291_v12 }
 0x18f   :  { %1294 = vmatprep.subr.bf16.mxu1 %v1293_v13 }
 0x192   :  { %1296 = vmatpush1.bf16.msra.mxu1 %v1295_v19 }
 0x193   :  { %1298 = vmatprep.subr.bf16.mxu1 %v1297_v5 }
 0x196   :  { %1300 = vmatpush1.bf16.msra.mxu1 %v1299_v24 }
 0x197   :  { %1302 = vmatprep.subr.bf16.mxu1 %v1301_v25 }
 0x19a   :  { %1304 = vmatpush1.bf16.msra.mxu1 %v1303_v30 }
 0x19b   :  { %1306 = vmatprep.subr.bf16.mxu1 %v1305_v31 }
 0x19e   :  { %1308 = vmatpush1.bf16.msra.mxu1 %v1307_v3 }
 0x19f   :  { %1310 = vmatprep.subr.bf16.mxu1 %v1309_v34 }
 0x1a2   :  { %1312 = vmatpush1.bf16.msra.mxu1 %v1311_v39 }
 0x1a3   :  { %1314 = vmatprep.subr.bf16.mxu1 %v1313_v40 }
 0x1a6   :  { %1316 = vmatpush1.bf16.msra.mxu1 %v1315_v45 }
 0x1a7   :  { %1318 = vmatprep.subr.bf16.mxu1 %v1317_v46 }
 0x1aa   :  { %1320 = vmatpush1.bf16.msra.mxu1 %v1319_v48 }
 0x1ad   :  { %1072 = vmatmul.mubr.f32.vlgmr.msra.gmra.mrb[2].mxu1 %v1402_v49 }
 0x1ba   :  { %v1144_v52 = vpop.f32.mrb[2].mxu0 }
 0x1bb   :  { %v1146_v53 = vpop.f32.mrb[3].mxu0 }
 0x234   :  { %v789_v54 = vpop.f32.mrb[0].mxu1 }
 0x235   :  { %v1003_v55 = vadd.f32 %v1002_v50, %v789_v54  ;;  %v791_v56 = vpop.f32.mrb[1].mxu1 }
 0x236   :  { %v1005_v57 = vadd.f32 %v1004_v51, %v791_v56 }
 0x237   :  { %1149 = vst [vmem:[#allocation10] sm:$0xff] %v1003_v55 }
 0x238   :  { %1150 = vst [vmem:[#allocation10 + $0x8] sm:$0xff] %v1005_v57 }
 0x240   :  { %v931_v58 = vpop.f32.mrb[4].mxu1 }
 0x241   :  { %v1145_v59 = vadd.f32 %v1144_v52, %v931_v58  ;;  %v933_v60 = vpop.f32.mrb[5].mxu1 }
 0x242   :  { %v1147_v61 = vadd.f32 %v1146_v53, %v933_v60 }
 0x243   :  { %1153 = vst [vmem:[#allocation10 + $0x20] sm:$0xff] %v1145_v59 }
 0x244   :  { %1154 = vst [vmem:[#allocation10 + $0x28] sm:$0xff] %v1147_v61 }
 0x280   :  { %v1073_v62 = vpop.f32.mrb[2].mxu1 }
 0x281   :  { %1151 = vst [vmem:[#allocation10 + $0x10] sm:$0xff] %v1073_v62  ;;  %v1075_v63 = vpop.f32.mrb[3].mxu1 }
 0x282   :  { %1152 = vst [vmem:[#allocation10 + $0x18] sm:$0xff] %v1075_v63 }
 0x283   :  { %1502 = shalt.err (!%p1499_p8)
}
 0x284   :  { %s1503_s15 = scalar_lea.hbm %s1744_s4, 768 }
 0x285   :  { %p1504_p9 = scmp.ne.s32.totalorder %s1744_s4, %s1503_s15  ;;  %p1507_p10 = scmp.lt.u32.totalorder %s1503_s15, %s1744_s4 }
 0x287   :  { %p1509_p11 = pnand %p1507_p10, %p1504_p9 }
 0x289   :  { %1512 = shalt.err (!%p1509_p11)
}
 0x28a   :  { %1164 = dma.vmem_to_hbm [thread:$0]  %s1162_s25, 768, %s1744_s4, [#allocation4]  }
 0x28b   :  { %1519 = dma.done.wait [#allocation4], 768  }
 0x28c   :  { %1520 = vsyncadd [#allocation4], 4294966528 }
 0x28d   :  { %1168 = vsyncpa [#allocation3], 1 }
 0x28e   :  { %1169 = vsyncpa [#allocation6], 1 }
 0x28f   :  { %1170 = vsyncpa [#allocation9], 1 }
 0x290   :  { %1171 = vsyncpa [#allocation4], 1 }

</bundles_post_ra>
